<compile_context>
chip_gen: v7x
topology: tpu7x:2x2x1
jax: 0.10.0
libtpu: 0.0.40
codegen_flags: <defaults>
</compile_context>

<pallas_src>
from functools import partial

import numpy as np
import jax
import jax.numpy as jnp
from jax import lax
from jax.experimental import pallas as pl
from jax.experimental.pallas import tpu as pltpu


# ----------------------------------------------------------------------------
# Fused kernel: per grid step, one block of `nb` batch elements.
#   x_ref   : (nb, T, A, F)   raw ATA inputs (obs + agent-id + one-hot actions)
#   out_ref : (nb, T, A)      linear(seq).squeeze(-1)
#   out0_ref: (nb, T, 1)      linear(agg(seq)).squeeze(-1)
#   seq_ref : VMEM scratch (nb, T, A, H) — holds ci before the loop, h after.
# ----------------------------------------------------------------------------
def _ata_fused_kernel(x_ref, wci_ref, bci_ref, wig_ref, big_ref, w2_ref, b2_ref,
                      out_ref, out0_ref, seq_ref, *, n_units, weighted_agg):
    nb, T, A, F = x_ref.shape
    H = wci_ref.shape[1]
    BA = nb * A

    # ---- 1) hoisted input projection -------------------------------------------------
    # ci_t depends only on x_t, so compute tanh(X @ W_ci + b_ci) for ALL timesteps in one
    # well-shaped MXU matmul instead of T tiny matmuls inside the serial recurrence.
    x2 = x_ref[...].reshape(nb * T * A, F)
    ci = jnp.tanh(jnp.dot(x2, wci_ref[...], preferred_element_type=jnp.float32)
                  + bci_ref[...])
    seq_ref[...] = ci.reshape(nb, T, A, H)

    # ---- 2) serial recurrence over time ----------------------------------------------
    # Only the recurrent input-gate matmul + elementwise ops remain on the critical
    # chain; h/c live in carries (vregs). Slot t is overwritten in place with h_t so one
    # scratch buffer serves both ci storage and the seq output (halves scratch VMEM).
    w_ig = wig_ref[...]
    b_ig = big_ref[...]

    def step(t, hc):
        h, c = hc
        ci_t = seq_ref[:, pl.ds(t, 1), :, :].reshape(BA, H)
        ig = jax.nn.sigmoid(
            jnp.dot(h, w_ig, preferred_element_type=jnp.float32) + b_ig)
        c = c + ci_t * ig                      # no forget gate
        h = jnp.tanh(c)                        # no output gate, a_out = tanh
        seq_ref[:, pl.ds(t, 1), :, :] = h.reshape(nb, 1, A, H)
        return h, c

    zeros = jnp.zeros((BA, H), jnp.float32)
    unroll = True if T <= 32 else 8            # LLO visibility on the latency-bound loop
    lax.fori_loop(0, T, step, (zeros, zeros), unroll=unroll)

    # ---- 3) fused heads ---------------------------------------------------------------
    # [w_att | w_lin] stacked into one (H, 2) matrix -> both heads share a single MXU
    # matmul over the whole block (no VPU mul + cross-lane reductions over H).
    seq = seq_ref[...].reshape(nb * T * A, H)
    proj = jnp.dot(seq, w2_ref[...], preferred_element_type=jnp.float32) + b2_ref[...]
    proj = proj.reshape(nb, T, A, 2)
    lin = proj[..., 1]                                          # (nb, T, A) = linear(seq)
    if weighted_agg:
        logits = proj[..., 0] * (1.0 / n_units)                 # attention(seq) / n_units
        m = jnp.max(logits, axis=-1, keepdims=True)
        e = jnp.exp(logits - m)
        attn = e * pl.reciprocal(jnp.sum(e, axis=-1, keepdims=True), approx=True)
        # linear is affine and softmax weights sum to 1 =>
        #   linear(sum_a attn_a * seq_a) == sum_a attn_a * linear(seq_a)
        out0 = jnp.sum(attn * lin, axis=-1, keepdims=True)      # (nb, T, 1)
    else:
        out0 = jnp.mean(lin, axis=-1, keepdims=True)            # (nb, T, 1)
    # Outputs are tiny (no H factor) relative to the streamed input, so the A-wide /
    # 1-wide store lanes are not the bottleneck of this fused kernel.
    out_ref[...] = lin
    out0_ref[...] = out0


def _pick_block_batch(B, T, A, F, H, budget_bytes=20 << 20):
    """Largest nb dividing B such that double-buffered blocks + scratch fit the VMEM
    budget (accounting for (8,128) tile padding), preferring >= 2 grid steps so the
    'parallel' axis can be split across TensorCores (v7x)."""
    def pad(r, c):
        return (-(-r // 8) * 8) * (-(-c // 128) * 128) * 4

    def vmem(nb):
        x_blk = nb * T * pad(A, F)
        scr = nb * T * pad(A, H)
        o_blk = nb * (pad(T, A) + pad(T, 1))
        w = pad(F, H) + pad(H, H) + 2 * pad(1, H) + pad(H, 2) + pad(1, 2)
        return 2 * x_blk + 2 * o_blk + scr + 2 * w

    divisors = [d for d in range(1, B + 1) if B % d == 0 and vmem(d) <= budget_bytes]
    if not divisors:
        return 1
    multi = [d for d in divisors if B // d >= 2]
    return max(multi) if multi else max(divisors)


# ----------------------------------------------------------------------------
# ATA.forward wrapper — no transposes / no HBM intermediates; everything fused.
# ----------------------------------------------------------------------------
def ata_forward(x, params, n_units, weighted_agg, *, block_batch=None):
    B, T, A, F = x.shape
    H = n_units
    nb = block_batch if block_batch is not None else _pick_block_batch(B, T, A, F, H)
    assert B % nb == 0, "block_batch must divide the batch size"

    # fuse the two 1-wide linear heads into a single (H, 2) projection
    w2 = jnp.concatenate([params["w_att"], params["w_lin"]], axis=0).T    # (H, 2)
    b2 = jnp.concatenate([params["b_att"], params["b_lin"]], axis=1)      # (1, 2)

    kernel = partial(_ata_fused_kernel, n_units=float(n_units),
                     weighted_agg=bool(weighted_agg))

    out, out0 = pl.pallas_call(
        kernel,
        out_shape=(jax.ShapeDtypeStruct((B, T, A), jnp.float32),
                   jax.ShapeDtypeStruct((B, T, 1), jnp.float32)),
        grid=(B // nb,),
        in_specs=[
            pl.BlockSpec((nb, T, A, F), lambda i: (i, 0, 0, 0)),
            pl.BlockSpec((F, H), lambda i: (0, 0)),
            pl.BlockSpec((1, H), lambda i: (0, 0)),
            pl.BlockSpec((H, H), lambda i: (0, 0)),
            pl.BlockSpec((1, H), lambda i: (0, 0)),
            pl.BlockSpec((H, 2), lambda i: (0, 0)),
            pl.BlockSpec((1, 2), lambda i: (0, 0)),
        ],
        out_specs=(
            pl.BlockSpec((nb, T, A), lambda i: (i, 0, 0)),
            pl.BlockSpec((nb, T, 1), lambda i: (i, 0, 0)),
        ),
        scratch_shapes=[pltpu.VMEM((nb, T, A, H), jnp.float32)],
        compiler_params=pltpu.CompilerParams(
            dimension_semantics=("parallel",),
            vmem_limit_bytes=32 * 1024 * 1024),   # explicit budget; safe on v5e/v6e/v7x
    )(x, params["w_ci"], params["b_ci"], params["w_ig"], params["b_ig"], w2, b2)
    return out, out0


# ----------------------------------------------------------------------------
# Pure-JAX reference for verification (mirrors the PyTorch forward)
# ----------------------------------------------------------------------------
def ata_forward_ref(x, params, n_units, weighted_agg):
    B, T, A, F = x.shape
    H = n_units
    xr = jnp.transpose(x, (0, 2, 1, 3)).reshape(B * A, T, F)

    def step(carry, x_t):
        h, c = carry
        ci = jnp.tanh(x_t @ params["w_ci"] + params["b_ci"][0])
        ig = jax.nn.sigmoid(h @ params["w_ig"] + params["b_ig"][0])
        c = c + ci * ig
        h = jnp.tanh(c)
        return (h, c), h

    h0 = jnp.zeros((B * A, H), jnp.float32)
    _, hs = lax.scan(step, (h0, h0), jnp.transpose(xr, (1, 0, 2)))
    seq = jnp.transpose(hs, (1, 0, 2)).reshape(B, A, T, H)
    seq = jnp.transpose(seq, (0, 2, 1, 3))                                  # (B, T, A, H)

    att = jnp.sum(seq * params["w_att"][0], axis=-1, keepdims=True) + params["b_att"][0, 0]
    if weighted_agg:
        w = jax.nn.softmax(att / n_units, axis=-2)
        seq0 = jnp.sum(w * seq, axis=-2, keepdims=True)
    else:
        seq0 = jnp.mean(seq, axis=-2, keepdims=True)
    out = jnp.sum(seq * params["w_lin"][0], axis=-1) + params["b_lin"][0, 0]     # (B, T, A)
    out0 = jnp.sum(seq0 * params["w_lin"][0], axis=-1) + params["b_lin"][0, 0]   # (B, T, 1)
    return out, out0


if __name__ == "__main__":
    # small shapes: batch=2, seq_len=8, n_agents=4, feat=16 (obs+agent_id+one-hot actions), n_rr=32
    B, T, A, F, H = 2, 8, 4, 16, 32

    key = jax.random.PRNGKey(0)
    ks = jax.random.split(key, 9)
    inv = 1.0 / np.sqrt(H)
    params = {
        # LSTMLayer init: w_ci forward ~ N(0, 0.1), w_ig recurrent ~ N(0, 0.1), biases ~ N(0, 1)
        "w_ci": 0.1 * jax.random.normal(ks[0], (F, H), jnp.float32),
        "b_ci": jax.random.normal(ks[1], (1, H), jnp.float32),
        "w_ig": 0.1 * jax.random.normal(ks[2], (H, H), jnp.float32),
        "b_ig": jax.random.normal(ks[3], (1, H), jnp.float32),
        # nn.Linear(n_units, 1) style params (deterministic synthetic init)
        "w_att": jax.random.uniform(ks[4], (1, H), jnp.float32, -inv, inv),
        "b_att": jax.random.uniform(ks[5], (1, 1), jnp.float32, -inv, inv),
        "w_lin": jax.random.uniform(ks[6], (1, H), jnp.float32, -inv, inv),
        "b_lin": jax.random.uniform(ks[7], (1, 1), jnp.float32, -inv, inv),
    }
    x = jax.random.normal(ks[8], (B, T, A, F), jnp.float32)

    for weighted_agg in (True, False):
        out, out0 = ata_forward(x, params, H, weighted_agg)
        jax.block_until_ready((out, out0))
        ref_out, ref_out0 = ata_forward_ref(x, params, H, weighted_agg)
        np.testing.assert_allclose(np.asarray(out), np.asarray(ref_out),
                                   rtol=1e-4, atol=1e-4)
        # out0 uses the EUP approximate reciprocal in the softmax normalization,
        # so allow a slightly looser tolerance than the exact-division reference.
        np.testing.assert_allclose(np.asarray(out0), np.asarray(ref_out0),
                                   rtol=5e-3, atol=5e-3)
        assert out.shape == (B, T, A) and out0.shape == (B, T, 1)

    print("KERNEL_OK")
</pallas_src>

<mosaic_0001>
module attributes {stable_mosaic.version = 11 : i64} {
  func.func @_ata_fused_kernel(%arg0: i32, %arg1: memref<1x8x4x16xf32, #tpu.memory_space<vmem>>, %arg2: memref<16x32xf32, #tpu.memory_space<vmem>>, %arg3: memref<1x32xf32, #tpu.memory_space<vmem>>, %arg4: memref<32x32xf32, #tpu.memory_space<vmem>>, %arg5: memref<1x32xf32, #tpu.memory_space<vmem>>, %arg6: memref<32x2xf32, #tpu.memory_space<vmem>>, %arg7: memref<1x2xf32, #tpu.memory_space<vmem>>, %arg8: memref<1x8x4xf32, #tpu.memory_space<vmem>>, %arg9: memref<1x8x1xf32, #tpu.memory_space<vmem>>, %arg10: memref<1x8x4x32xf32, #tpu.memory_space<vmem>>) attributes {dimension_semantics = [#tpu.dimension_semantics<parallel>], iteration_bounds = array<i64: 2>, scalar_prefetch = 0 : i64, scratch_operands = 1 : i64, tpu.core_type = #tpu.core_type<tc>, window_params = [{transform_indices = @transform_0, window_bounds = array<i64: 1, 8, 4, 16>}, {pipeline_mode = #tpu.pipeline_mode<synchronous>, transform_indices = @transform_1, window_bounds = array<i64: 16, 32>}, {pipeline_mode = #tpu.pipeline_mode<synchronous>, transform_indices = @transform_2, window_bounds = array<i64: 1, 32>}, {pipeline_mode = #tpu.pipeline_mode<synchronous>, transform_indices = @transform_3, window_bounds = array<i64: 32, 32>}, {pipeline_mode = #tpu.pipeline_mode<synchronous>, transform_indices = @transform_4, window_bounds = array<i64: 1, 32>}, {pipeline_mode = #tpu.pipeline_mode<synchronous>, transform_indices = @transform_5, window_bounds = array<i64: 32, 2>}, {pipeline_mode = #tpu.pipeline_mode<synchronous>, transform_indices = @transform_6, window_bounds = array<i64: 1, 2>}, {transform_indices = @transform_7, window_bounds = array<i64: 1, 8, 4>}, {transform_indices = @transform_8, window_bounds = array<i64: 1, 8, 1>}]} {
    %c0 = arith.constant 0 : index
    %c0_0 = arith.constant 0 : index
    %c0_1 = arith.constant 0 : index
    %c0_2 = arith.constant 0 : index
    %0 = vector.load %arg1[%c0, %c0_0, %c0_1, %c0_2] : memref<1x8x4x16xf32, #tpu.memory_space<vmem>>, vector<1x8x4x16xf32>
    %1 = vector.shape_cast %0 : vector<1x8x4x16xf32> to vector<32x16xf32>
    %c0_3 = arith.constant 0 : index
    %c0_4 = arith.constant 0 : index
    %2 = vector.load %arg2[%c0_3, %c0_4] : memref<16x32xf32, #tpu.memory_space<vmem>>, vector<16x32xf32>
    %cst = arith.constant dense<0.000000e+00> : vector<32x32xf32>
    %3 = tpu.matmul %1, %2, %cst {dimension_numbers = #tpu.dot_dimension_numbers<[1], [0], [0], [1], [0, 0, 1, 1], [], []>} : vector<32x16xf32>, vector<16x32xf32>, vector<32x32xf32> -> vector<32x32xf32>
    %c0_5 = arith.constant 0 : index
    %c0_6 = arith.constant 0 : index
    %4 = vector.load %arg3[%c0_5, %c0_6] : memref<1x32xf32, #tpu.memory_space<vmem>>, vector<1x32xf32>
    %5 = vector.broadcast %4 : vector<1x32xf32> to vector<32x32xf32>
    %6 = arith.addf %3, %5 : vector<32x32xf32>
    %7 = math.tanh %6 : vector<32x32xf32>
    %8 = vector.shape_cast %7 : vector<32x32xf32> to vector<1x8x4x32xf32>
    %c0_7 = arith.constant 0 : index
    %c0_8 = arith.constant 0 : index
    %c0_9 = arith.constant 0 : index
    %c0_10 = arith.constant 0 : index
    %9 = vector.load %arg10[%c0_7, %c0_8, %c0_9, %c0_10] : memref<1x8x4x32xf32, #tpu.memory_space<vmem>>, vector<1x8x4x32xf32>
    tpu.vector_store %arg10[%c0_7, %c0_8, %c0_9, %c0_10], %8 {strides = array<i32>} : memref<1x8x4x32xf32, #tpu.memory_space<vmem>>, vector<1x8x4x32xf32>,
    %c0_11 = arith.constant 0 : index
    %c0_12 = arith.constant 0 : index
    %10 = vector.load %arg4[%c0_11, %c0_12] : memref<32x32xf32, #tpu.memory_space<vmem>>, vector<32x32xf32>
    %c0_13 = arith.constant 0 : index
    %c0_14 = arith.constant 0 : index
    %11 = vector.load %arg5[%c0_13, %c0_14] : memref<1x32xf32, #tpu.memory_space<vmem>>, vector<1x32xf32>
    %cst_15 = arith.constant 0.000000e+00 : f32
    %12 = vector.broadcast %cst_15 : f32 to vector<4x32xf32>
    %c0_i32 = arith.constant 0 : i32
    %c0_16 = arith.constant 0 : index
    %13 = arith.index_cast %c0_i32 : i32 to index
    %c0_17 = arith.constant 0 : index
    %c0_18 = arith.constant 0 : index
    %14 = vector.load %arg10[%c0_16, %13, %c0_17, %c0_18] : memref<1x8x4x32xf32, #tpu.memory_space<vmem>>, vector<1x1x4x32xf32>
    %15 = vector.shape_cast %14 : vector<1x1x4x32xf32> to vector<4x32xf32>
    %cst_19 = arith.constant dense<0.000000e+00> : vector<4x32xf32>
    %16 = tpu.matmul %12, %10, %cst_19 {dimension_numbers = #tpu.dot_dimension_numbers<[1], [0], [0], [1], [0, 0, 1, 1], [], []>} : vector<4x32xf32>, vector<32x32xf32>, vector<4x32xf32> -> vector<4x32xf32>
    %17 = vector.broadcast %11 : vector<1x32xf32> to vector<4x32xf32>
    %18 = arith.addf %16, %17 : vector<4x32xf32>
    %19 = arith.negf %18 : vector<4x32xf32>
    %20 = math.exp %19 : vector<4x32xf32>
    %cst_20 = arith.constant 1.000000e+00 : f32
    %21 = vector.broadcast %cst_20 : f32 to vector<4x32xf32>
    %22 = arith.addf %21, %20 : vector<4x32xf32>
    %23 = arith.divf %21, %22 : vector<4x32xf32>
    %24 = arith.mulf %15, %23 : vector<4x32xf32>
    %25 = arith.addf %12, %24 : vector<4x32xf32>
    %26 = math.tanh %25 : vector<4x32xf32>
    %27 = vector.shape_cast %26 : vector<4x32xf32> to vector<1x1x4x32xf32>
    %c0_21 = arith.constant 0 : index
    %28 = arith.index_cast %c0_i32 : i32 to index
    %c0_22 = arith.constant 0 : index
    %c0_23 = arith.constant 0 : index
    %29 = vector.load %arg10[%c0_21, %28, %c0_22, %c0_23] : memref<1x8x4x32xf32, #tpu.memory_space<vmem>>, vector<1x1x4x32xf32>
    tpu.vector_store %arg10[%c0_21, %28, %c0_22, %c0_23], %27 {strides = array<i32>} : memref<1x8x4x32xf32, #tpu.memory_space<vmem>>, vector<1x1x4x32xf32>,
    %c1_i32 = arith.constant 1 : i32
    %c0_24 = arith.constant 0 : index
    %30 = arith.index_cast %c1_i32 : i32 to index
    %c0_25 = arith.constant 0 : index
    %c0_26 = arith.constant 0 : index
    %31 = vector.load %arg10[%c0_24, %30, %c0_25, %c0_26] : memref<1x8x4x32xf32, #tpu.memory_space<vmem>>, vector<1x1x4x32xf32>
    %32 = vector.shape_cast %31 : vector<1x1x4x32xf32> to vector<4x32xf32>
    %cst_27 = arith.constant dense<0.000000e+00> : vector<4x32xf32>
    %33 = tpu.matmul %26, %10, %cst_27 {dimension_numbers = #tpu.dot_dimension_numbers<[1], [0], [0], [1], [0, 0, 1, 1], [], []>} : vector<4x32xf32>, vector<32x32xf32>, vector<4x32xf32> -> vector<4x32xf32>
    %34 = vector.broadcast %11 : vector<1x32xf32> to vector<4x32xf32>
    %35 = arith.addf %33, %34 : vector<4x32xf32>
    %36 = arith.negf %35 : vector<4x32xf32>
    %37 = math.exp %36 : vector<4x32xf32>
    %cst_28 = arith.constant 1.000000e+00 : f32
    %38 = vector.broadcast %cst_28 : f32 to vector<4x32xf32>
    %39 = arith.addf %38, %37 : vector<4x32xf32>
    %40 = arith.divf %38, %39 : vector<4x32xf32>
    %41 = arith.mulf %32, %40 : vector<4x32xf32>
    %42 = arith.addf %25, %41 : vector<4x32xf32>
    %43 = math.tanh %42 : vector<4x32xf32>
    %44 = vector.shape_cast %43 : vector<4x32xf32> to vector<1x1x4x32xf32>
    %c0_29 = arith.constant 0 : index
    %45 = arith.index_cast %c1_i32 : i32 to index
    %c0_30 = arith.constant 0 : index
    %c0_31 = arith.constant 0 : index
    %46 = vector.load %arg10[%c0_29, %45, %c0_30, %c0_31] : memref<1x8x4x32xf32, #tpu.memory_space<vmem>>, vector<1x1x4x32xf32>
    tpu.vector_store %arg10[%c0_29, %45, %c0_30, %c0_31], %44 {strides = array<i32>} : memref<1x8x4x32xf32, #tpu.memory_space<vmem>>, vector<1x1x4x32xf32>,
    %c2_i32 = arith.constant 2 : i32
    %c0_32 = arith.constant 0 : index
    %47 = arith.index_cast %c2_i32 : i32 to index
    %c0_33 = arith.constant 0 : index
    %c0_34 = arith.constant 0 : index
    %48 = vector.load %arg10[%c0_32, %47, %c0_33, %c0_34] : memref<1x8x4x32xf32, #tpu.memory_space<vmem>>, vector<1x1x4x32xf32>
    %49 = vector.shape_cast %48 : vector<1x1x4x32xf32> to vector<4x32xf32>
    %cst_35 = arith.constant dense<0.000000e+00> : vector<4x32xf32>
    %50 = tpu.matmul %43, %10, %cst_35 {dimension_numbers = #tpu.dot_dimension_numbers<[1], [0], [0], [1], [0, 0, 1, 1], [], []>} : vector<4x32xf32>, vector<32x32xf32>, vector<4x32xf32> -> vector<4x32xf32>
    %51 = vector.broadcast %11 : vector<1x32xf32> to vector<4x32xf32>
    %52 = arith.addf %50, %51 : vector<4x32xf32>
    %53 = arith.negf %52 : vector<4x32xf32>
    %54 = math.exp %53 : vector<4x32xf32>
    %cst_36 = arith.constant 1.000000e+00 : f32
    %55 = vector.broadcast %cst_36 : f32 to vector<4x32xf32>
    %56 = arith.addf %55, %54 : vector<4x32xf32>
    %57 = arith.divf %55, %56 : vector<4x32xf32>
    %58 = arith.mulf %49, %57 : vector<4x32xf32>
    %59 = arith.addf %42, %58 : vector<4x32xf32>
    %60 = math.tanh %59 : vector<4x32xf32>
    %61 = vector.shape_cast %60 : vector<4x32xf32> to vector<1x1x4x32xf32>
    %c0_37 = arith.constant 0 : index
    %62 = arith.index_cast %c2_i32 : i32 to index
    %c0_38 = arith.constant 0 : index
    %c0_39 = arith.constant 0 : index
    %63 = vector.load %arg10[%c0_37, %62, %c0_38, %c0_39] : memref<1x8x4x32xf32, #tpu.memory_space<vmem>>, vector<1x1x4x32xf32>
    tpu.vector_store %arg10[%c0_37, %62, %c0_38, %c0_39], %61 {strides = array<i32>} : memref<1x8x4x32xf32, #tpu.memory_space<vmem>>, vector<1x1x4x32xf32>,
    %c3_i32 = arith.constant 3 : i32
    %c0_40 = arith.constant 0 : index
    %64 = arith.index_cast %c3_i32 : i32 to index
    %c0_41 = arith.constant 0 : index
    %c0_42 = arith.constant 0 : index
    %65 = vector.load %arg10[%c0_40, %64, %c0_41, %c0_42] : memref<1x8x4x32xf32, #tpu.memory_space<vmem>>, vector<1x1x4x32xf32>
    %66 = vector.shape_cast %65 : vector<1x1x4x32xf32> to vector<4x32xf32>
    %cst_43 = arith.constant dense<0.000000e+00> : vector<4x32xf32>
    %67 = tpu.matmul %60, %10, %cst_43 {dimension_numbers = #tpu.dot_dimension_numbers<[1], [0], [0], [1], [0, 0, 1, 1], [], []>} : vector<4x32xf32>, vector<32x32xf32>, vector<4x32xf32> -> vector<4x32xf32>
    %68 = vector.broadcast %11 : vector<1x32xf32> to vector<4x32xf32>
    %69 = arith.addf %67, %68 : vector<4x32xf32>
    %70 = arith.negf %69 : vector<4x32xf32>
    %71 = math.exp %70 : vector<4x32xf32>
    %cst_44 = arith.constant 1.000000e+00 : f32
    %72 = vector.broadcast %cst_44 : f32 to vector<4x32xf32>
    %73 = arith.addf %72, %71 : vector<4x32xf32>
    %74 = arith.divf %72, %73 : vector<4x32xf32>
    %75 = arith.mulf %66, %74 : vector<4x32xf32>
    %76 = arith.addf %59, %75 : vector<4x32xf32>
    %77 = math.tanh %76 : vector<4x32xf32>
    %78 = vector.shape_cast %77 : vector<4x32xf32> to vector<1x1x4x32xf32>
    %c0_45 = arith.constant 0 : index
    %79 = arith.index_cast %c3_i32 : i32 to index
    %c0_46 = arith.constant 0 : index
    %c0_47 = arith.constant 0 : index
    %80 = vector.load %arg10[%c0_45, %79, %c0_46, %c0_47] : memref<1x8x4x32xf32, #tpu.memory_space<vmem>>, vector<1x1x4x32xf32>
    tpu.vector_store %arg10[%c0_45, %79, %c0_46, %c0_47], %78 {strides = array<i32>} : memref<1x8x4x32xf32, #tpu.memory_space<vmem>>, vector<1x1x4x32xf32>,
    %c4_i32 = arith.constant 4 : i32
    %c0_48 = arith.constant 0 : index
    %81 = arith.index_cast %c4_i32 : i32 to index
    %c0_49 = arith.constant 0 : index
    %c0_50 = arith.constant 0 : index
    %82 = vector.load %arg10[%c0_48, %81, %c0_49, %c0_50] : memref<1x8x4x32xf32, #tpu.memory_space<vmem>>, vector<1x1x4x32xf32>
    %83 = vector.shape_cast %82 : vector<1x1x4x32xf32> to vector<4x32xf32>
    %cst_51 = arith.constant dense<0.000000e+00> : vector<4x32xf32>
    %84 = tpu.matmul %77, %10, %cst_51 {dimension_numbers = #tpu.dot_dimension_numbers<[1], [0], [0], [1], [0, 0, 1, 1], [], []>} : vector<4x32xf32>, vector<32x32xf32>, vector<4x32xf32> -> vector<4x32xf32>
    %85 = vector.broadcast %11 : vector<1x32xf32> to vector<4x32xf32>
    %86 = arith.addf %84, %85 : vector<4x32xf32>
    %87 = arith.negf %86 : vector<4x32xf32>
    %88 = math.exp %87 : vector<4x32xf32>
    %cst_52 = arith.constant 1.000000e+00 : f32
    %89 = vector.broadcast %cst_52 : f32 to vector<4x32xf32>
    %90 = arith.addf %89, %88 : vector<4x32xf32>
    %91 = arith.divf %89, %90 : vector<4x32xf32>
    %92 = arith.mulf %83, %91 : vector<4x32xf32>
    %93 = arith.addf %76, %92 : vector<4x32xf32>
    %94 = math.tanh %93 : vector<4x32xf32>
    %95 = vector.shape_cast %94 : vector<4x32xf32> to vector<1x1x4x32xf32>
    %c0_53 = arith.constant 0 : index
    %96 = arith.index_cast %c4_i32 : i32 to index
    %c0_54 = arith.constant 0 : index
    %c0_55 = arith.constant 0 : index
    %97 = vector.load %arg10[%c0_53, %96, %c0_54, %c0_55] : memref<1x8x4x32xf32, #tpu.memory_space<vmem>>, vector<1x1x4x32xf32>
    tpu.vector_store %arg10[%c0_53, %96, %c0_54, %c0_55], %95 {strides = array<i32>} : memref<1x8x4x32xf32, #tpu.memory_space<vmem>>, vector<1x1x4x32xf32>,
    %c5_i32 = arith.constant 5 : i32
    %c0_56 = arith.constant 0 : index
    %98 = arith.index_cast %c5_i32 : i32 to index
    %c0_57 = arith.constant 0 : index
    %c0_58 = arith.constant 0 : index
    %99 = vector.load %arg10[%c0_56, %98, %c0_57, %c0_58] : memref<1x8x4x32xf32, #tpu.memory_space<vmem>>, vector<1x1x4x32xf32>
    %100 = vector.shape_cast %99 : vector<1x1x4x32xf32> to vector<4x32xf32>
    %cst_59 = arith.constant dense<0.000000e+00> : vector<4x32xf32>
    %101 = tpu.matmul %94, %10, %cst_59 {dimension_numbers = #tpu.dot_dimension_numbers<[1], [0], [0], [1], [0, 0, 1, 1], [], []>} : vector<4x32xf32>, vector<32x32xf32>, vector<4x32xf32> -> vector<4x32xf32>
    %102 = vector.broadcast %11 : vector<1x32xf32> to vector<4x32xf32>
    %103 = arith.addf %101, %102 : vector<4x32xf32>
    %104 = arith.negf %103 : vector<4x32xf32>
    %105 = math.exp %104 : vector<4x32xf32>
    %cst_60 = arith.constant 1.000000e+00 : f32
    %106 = vector.broadcast %cst_60 : f32 to vector<4x32xf32>
    %107 = arith.addf %106, %105 : vector<4x32xf32>
    %108 = arith.divf %106, %107 : vector<4x32xf32>
    %109 = arith.mulf %100, %108 : vector<4x32xf32>
    %110 = arith.addf %93, %109 : vector<4x32xf32>
    %111 = math.tanh %110 : vector<4x32xf32>
    %112 = vector.shape_cast %111 : vector<4x32xf32> to vector<1x1x4x32xf32>
    %c0_61 = arith.constant 0 : index
    %113 = arith.index_cast %c5_i32 : i32 to index
    %c0_62 = arith.constant 0 : index
    %c0_63 = arith.constant 0 : index
    %114 = vector.load %arg10[%c0_61, %113, %c0_62, %c0_63] : memref<1x8x4x32xf32, #tpu.memory_space<vmem>>, vector<1x1x4x32xf32>
    tpu.vector_store %arg10[%c0_61, %113, %c0_62, %c0_63], %112 {strides = array<i32>} : memref<1x8x4x32xf32, #tpu.memory_space<vmem>>, vector<1x1x4x32xf32>,
    %c6_i32 = arith.constant 6 : i32
    %c0_64 = arith.constant 0 : index
    %115 = arith.index_cast %c6_i32 : i32 to index
    %c0_65 = arith.constant 0 : index
    %c0_66 = arith.constant 0 : index
    %116 = vector.load %arg10[%c0_64, %115, %c0_65, %c0_66] : memref<1x8x4x32xf32, #tpu.memory_space<vmem>>, vector<1x1x4x32xf32>
    %117 = vector.shape_cast %116 : vector<1x1x4x32xf32> to vector<4x32xf32>
    %cst_67 = arith.constant dense<0.000000e+00> : vector<4x32xf32>
    %118 = tpu.matmul %111, %10, %cst_67 {dimension_numbers = #tpu.dot_dimension_numbers<[1], [0], [0], [1], [0, 0, 1, 1], [], []>} : vector<4x32xf32>, vector<32x32xf32>, vector<4x32xf32> -> vector<4x32xf32>
    %119 = vector.broadcast %11 : vector<1x32xf32> to vector<4x32xf32>
    %120 = arith.addf %118, %119 : vector<4x32xf32>
    %121 = arith.negf %120 : vector<4x32xf32>
    %122 = math.exp %121 : vector<4x32xf32>
    %cst_68 = arith.constant 1.000000e+00 : f32
    %123 = vector.broadcast %cst_68 : f32 to vector<4x32xf32>
    %124 = arith.addf %123, %122 : vector<4x32xf32>
    %125 = arith.divf %123, %124 : vector<4x32xf32>
    %126 = arith.mulf %117, %125 : vector<4x32xf32>
    %127 = arith.addf %110, %126 : vector<4x32xf32>
    %128 = math.tanh %127 : vector<4x32xf32>
    %129 = vector.shape_cast %128 : vector<4x32xf32> to vector<1x1x4x32xf32>
    %c0_69 = arith.constant 0 : index
    %130 = arith.index_cast %c6_i32 : i32 to index
    %c0_70 = arith.constant 0 : index
    %c0_71 = arith.constant 0 : index
    %131 = vector.load %arg10[%c0_69, %130, %c0_70, %c0_71] : memref<1x8x4x32xf32, #tpu.memory_space<vmem>>, vector<1x1x4x32xf32>
    tpu.vector_store %arg10[%c0_69, %130, %c0_70, %c0_71], %129 {strides = array<i32>} : memref<1x8x4x32xf32, #tpu.memory_space<vmem>>, vector<1x1x4x32xf32>,
    %c7_i32 = arith.constant 7 : i32
    %c0_72 = arith.constant 0 : index
    %132 = arith.index_cast %c7_i32 : i32 to index
    %c0_73 = arith.constant 0 : index
    %c0_74 = arith.constant 0 : index
    %133 = vector.load %arg10[%c0_72, %132, %c0_73, %c0_74] : memref<1x8x4x32xf32, #tpu.memory_space<vmem>>, vector<1x1x4x32xf32>
    %134 = vector.shape_cast %133 : vector<1x1x4x32xf32> to vector<4x32xf32>
    %cst_75 = arith.constant dense<0.000000e+00> : vector<4x32xf32>
    %135 = tpu.matmul %128, %10, %cst_75 {dimension_numbers = #tpu.dot_dimension_numbers<[1], [0], [0], [1], [0, 0, 1, 1], [], []>} : vector<4x32xf32>, vector<32x32xf32>, vector<4x32xf32> -> vector<4x32xf32>
    %136 = vector.broadcast %11 : vector<1x32xf32> to vector<4x32xf32>
    %137 = arith.addf %135, %136 : vector<4x32xf32>
    %138 = arith.negf %137 : vector<4x32xf32>
    %139 = math.exp %138 : vector<4x32xf32>
    %cst_76 = arith.constant 1.000000e+00 : f32
    %140 = vector.broadcast %cst_76 : f32 to vector<4x32xf32>
    %141 = arith.addf %140, %139 : vector<4x32xf32>
    %142 = arith.divf %140, %141 : vector<4x32xf32>
    %143 = arith.mulf %134, %142 : vector<4x32xf32>
    %144 = arith.addf %127, %143 : vector<4x32xf32>
    %145 = math.tanh %144 : vector<4x32xf32>
    %146 = vector.shape_cast %145 : vector<4x32xf32> to vector<1x1x4x32xf32>
    %c0_77 = arith.constant 0 : index
    %147 = arith.index_cast %c7_i32 : i32 to index
    %c0_78 = arith.constant 0 : index
    %c0_79 = arith.constant 0 : index
    %148 = vector.load %arg10[%c0_77, %147, %c0_78, %c0_79] : memref<1x8x4x32xf32, #tpu.memory_space<vmem>>, vector<1x1x4x32xf32>
    tpu.vector_store %arg10[%c0_77, %147, %c0_78, %c0_79], %146 {strides = array<i32>} : memref<1x8x4x32xf32, #tpu.memory_space<vmem>>, vector<1x1x4x32xf32>,
    %c8_i32 = arith.constant 8 : i32
    %c0_80 = arith.constant 0 : index
    %c0_81 = arith.constant 0 : index
    %c0_82 = arith.constant 0 : index
    %c0_83 = arith.constant 0 : index
    %149 = vector.load %arg10[%c0_80, %c0_81, %c0_82, %c0_83] : memref<1x8x4x32xf32, #tpu.memory_space<vmem>>, vector<1x8x4x32xf32>
    %150 = vector.shape_cast %149 : vector<1x8x4x32xf32> to vector<32x32xf32>
    %c0_84 = arith.constant 0 : index
    %c0_85 = arith.constant 0 : index
    %151 = vector.load %arg6[%c0_84, %c0_85] : memref<32x2xf32, #tpu.memory_space<vmem>>, vector<32x2xf32>
    %cst_86 = arith.constant dense<0.000000e+00> : vector<32x2xf32>
    %152 = tpu.matmul %150, %151, %cst_86 {dimension_numbers = #tpu.dot_dimension_numbers<[1], [0], [0], [1], [0, 0, 1, 1], [], []>} : vector<32x32xf32>, vector<32x2xf32>, vector<32x2xf32> -> vector<32x2xf32>
    %c0_87 = arith.constant 0 : index
    %c0_88 = arith.constant 0 : index
    %153 = vector.load %arg7[%c0_87, %c0_88] : memref<1x2xf32, #tpu.memory_space<vmem>>, vector<1x2xf32>
    %154 = vector.broadcast %153 : vector<1x2xf32> to vector<32x2xf32>
    %155 = arith.addf %152, %154 : vector<32x2xf32>
    %156 = vector.shape_cast %155 : vector<32x2xf32> to vector<1x8x4x2xf32>
    %157 = vector.extract_strided_slice %156 {offsets = [0, 0, 0, 1], sizes = [1, 8, 4, 1], strides = [1, 1, 1, 1]} : vector<1x8x4x2xf32> to vector<1x8x4x1xf32>
    %158 = vector.shape_cast %157 : vector<1x8x4x1xf32> to vector<1x8x4xf32>
    %159 = vector.extract_strided_slice %156 {offsets = [0, 0, 0, 0], sizes = [1, 8, 4, 1], strides = [1, 1, 1, 1]} : vector<1x8x4x2xf32> to vector<1x8x4x1xf32>
    %160 = vector.shape_cast %159 : vector<1x8x4x1xf32> to vector<1x8x4xf32>
    %cst_89 = arith.constant 3.125000e-02 : f32
    %161 = vector.broadcast %cst_89 : f32 to vector<1x8x4xf32>
    %162 = arith.mulf %160, %161 : vector<1x8x4xf32>
    %cst_90 = arith.constant dense<0xFF800000> : vector<1x8xf32>
    %163 = vector.multi_reduction <maximumf>, %162, %cst_90 [2] : vector<1x8x4xf32> to vector<1x8xf32>
    %164 = vector.shape_cast %163 : vector<1x8xf32> to vector<1x8x1xf32>
    %165 = vector.broadcast %164 : vector<1x8x1xf32> to vector<1x8x4xf32>
    %166 = arith.subf %162, %165 : vector<1x8x4xf32>
    %167 = math.exp %166 : vector<1x8x4xf32>
    %cst_91 = arith.constant dense<0.000000e+00> : vector<1x8xf32>
    %168 = vector.multi_reduction <add>, %167, %cst_91 [2] : vector<1x8x4xf32> to vector<1x8xf32>
    %169 = vector.shape_cast %168 : vector<1x8xf32> to vector<1x8x1xf32>
    %170 = tpu.reciprocal %169 {approx = true} : vector<1x8x1xf32> -> vector<1x8x1xf32>
    %171 = vector.broadcast %170 : vector<1x8x1xf32> to vector<1x8x4xf32>
    %172 = arith.mulf %167, %171 : vector<1x8x4xf32>
    %173 = arith.mulf %172, %158 : vector<1x8x4xf32>
    %cst_92 = arith.constant dense<0.000000e+00> : vector<1x8xf32>
    %174 = vector.multi_reduction <add>, %173, %cst_92 [2] : vector<1x8x4xf32> to vector<1x8xf32>
    %175 = vector.shape_cast %174 : vector<1x8xf32> to vector<1x8x1xf32>
    %c0_93 = arith.constant 0 : index
    %c0_94 = arith.constant 0 : index
    %c0_95 = arith.constant 0 : index
    %176 = vector.load %arg8[%c0_93, %c0_94, %c0_95] : memref<1x8x4xf32, #tpu.memory_space<vmem>>, vector<1x8x4xf32>
    tpu.vector_store %arg8[%c0_93, %c0_94, %c0_95], %158 {strides = array<i32>} : memref<1x8x4xf32, #tpu.memory_space<vmem>>, vector<1x8x4xf32>,
    %c0_96 = arith.constant 0 : index
    %c0_97 = arith.constant 0 : index
    %c0_98 = arith.constant 0 : index
    %177 = vector.load %arg9[%c0_96, %c0_97, %c0_98] : memref<1x8x1xf32, #tpu.memory_space<vmem>>, vector<1x8x1xf32>
    tpu.vector_store %arg9[%c0_96, %c0_97, %c0_98], %175 {strides = array<i32>} : memref<1x8x1xf32, #tpu.memory_space<vmem>>, vector<1x8x1xf32>,
    return
  }
  func.func @transform_0(%arg0: i32) -> (i32, i32, i32, i32) {
    %c0_i32 = arith.constant 0 : i32
    %c0_i32_0 = arith.constant 0 : i32
    %c0_i32_1 = arith.constant 0 : i32
    %c0_i32_2 = arith.constant 0 : i32
    return %arg0, %c0_i32, %c0_i32_0, %c0_i32_1 : i32, i32, i32, i32
  }
  func.func @transform_1(%arg0: i32) -> (i32, i32) {
    %c0_i32 = arith.constant 0 : i32
    %c0_i32_0 = arith.constant 0 : i32
    %c0_i32_1 = arith.constant 0 : i32
    return %c0_i32, %c0_i32_0 : i32, i32
  }
  func.func @transform_2(%arg0: i32) -> (i32, i32) {
    %c0_i32 = arith.constant 0 : i32
    %c0_i32_0 = arith.constant 0 : i32
    %c0_i32_1 = arith.constant 0 : i32
    return %c0_i32, %c0_i32_0 : i32, i32
  }
  func.func @transform_3(%arg0: i32) -> (i32, i32) {
    %c0_i32 = arith.constant 0 : i32
    %c0_i32_0 = arith.constant 0 : i32
    %c0_i32_1 = arith.constant 0 : i32
    return %c0_i32, %c0_i32_0 : i32, i32
  }
  func.func @transform_4(%arg0: i32) -> (i32, i32) {
    %c0_i32 = arith.constant 0 : i32
    %c0_i32_0 = arith.constant 0 : i32
    %c0_i32_1 = arith.constant 0 : i32
    return %c0_i32, %c0_i32_0 : i32, i32
  }
  func.func @transform_5(%arg0: i32) -> (i32, i32) {
    %c0_i32 = arith.constant 0 : i32
    %c0_i32_0 = arith.constant 0 : i32
    %c0_i32_1 = arith.constant 0 : i32
    return %c0_i32, %c0_i32_0 : i32, i32
  }
  func.func @transform_6(%arg0: i32) -> (i32, i32) {
    %c0_i32 = arith.constant 0 : i32
    %c0_i32_0 = arith.constant 0 : i32
    %c0_i32_1 = arith.constant 0 : i32
    return %c0_i32, %c0_i32_0 : i32, i32
  }
  func.func @transform_7(%arg0: i32) -> (i32, i32, i32) {
    %c0_i32 = arith.constant 0 : i32
    %c0_i32_0 = arith.constant 0 : i32
    %c0_i32_1 = arith.constant 0 : i32
    return %arg0, %c0_i32, %c0_i32_0 : i32, i32, i32
  }
  func.func @transform_8(%arg0: i32) -> (i32, i32, i32) {
    %c0_i32 = arith.constant 0 : i32
    %c0_i32_0 = arith.constant 0 : i32
    %c0_i32_1 = arith.constant 0 : i32
    return %arg0, %c0_i32, %c0_i32_0 : i32, i32, i32
  }
}

</mosaic_0001>

<bundles_post_ra>
// kernel: tpu_custom_call.1
= control target key start
LH: loop header
LB: loop body
LE: loop exit
PB: predicated region body
PF: predicated region fallthrough
CT: control target
= control target key end

     0   :  { %14 = vsyncpa [#allocation4], 0  ;;  %s3055_s0 = inlined_call_operand.hbm [shape: f32[2,8,4,16], index: 0, kind: input, shape index: {}]   ;;  %s3056_s1 = inlined_call_operand.hbm [shape: f32[16,32], index: 1, kind: input, shape index: {}]   ;;  %s3057_s2 = inlined_call_operand.vmem [shape: f32[1,32], index: 2, kind: input, shape index: {}]   ;;  %s3058_s3 = inlined_call_operand.vmem [shape: f32[32,32], index: 3, kind: input, shape index: {}]   ;;  %s3059_s4 = inlined_call_operand.vmem [shape: f32[1,32], index: 4, kind: input, shape index: {}]   ;;  %s3060_s5 = inlined_call_operand.vmem [shape: f32[32,2], index: 5, kind: input, shape index: {}]   ;;  %s3061_s6 = inlined_call_operand.vmem [shape: f32[1,2], index: 6, kind: input, shape index: {}]   ;;  %s3062_s7 = inlined_call_operand.vmem [shape: f32[2,8,4], index: 7, kind: output, shape index: {0}]   ;;  %s3063_s8 = inlined_call_operand.vmem [shape: f32[2,8,1], index: 8, kind: output, shape index: {1}]  }
   0x1   :  { %16 = vsyncpa [#allocation4 + $0x1], 0 }
   0x2   :  { %17 = vsyncpa [#allocation6], 0  ;;  %s2538_s27 = smov 0   ;;  %s2540_s28 = smov 0  }
   0x3   :  { %s2542_s29 = smov 0   ;;  %s2544_s30 = smov 0  }
   0x4 LB: > { %s2557_s9 = sadd.s32 4294967295, %s2477_s30   ;;  %p43_p0 = scmp.ne.s32.totalorder %s2469_s28, %s2465_s27  ;;  %s2477_s30 = sphi %s2544_s30, %s3078_s30   ;;  %s2473_s29 = sphi %s2542_s29, %s3077_s29   ;;  %s2469_s28 = sphi %s2540_s28, %s3076_s28   ;;  %s2465_s27 = sphi %s2538_s27, %s3075_s27  }
   0x5   : > { %p3064_p1 = scmp.eq.s32.totalorder %s2557_s9, 0  ;;  %p1967_p2 = scmp.ge.s32.totalorder %s2477_s30, 1 }
   0x6   : > { %p232_p3 = scmp.lt.s32.totalorder %s2477_s30, 3  ;;  %s2479_s12 = smov [#allocation5]  }
   0x7   : > { %p2565_p4 = por %p3064_p1, %p43_p0  ;;  %s244_s13 = sshll.u32 %s2479_s12, 4  ;;  %s245_s13 = int_to_ptr.vmem [resolvable:$true] %s244_s13 }
   0x8   : > { %p2569_p5 = pnand %p1967_p2, %p232_p3  ;;  %s2582_s15 = sadd.s32 1, %s2477_s30  }
   0x9   : > { %s3067_s10 = scalar_select %p2565_p4, 1, 0 }
   0xa   : > { %s3068_s11 = scalar_select %p2569_p5, 1, 0 }
   0xb   : > { %p2239_p6 = pneg %p2569_p5  ;;  %s30_s16 = sadd.s32 1, %s2473_s29 }
   0xc   : > { %s27_s17 = ssub.s32 %s2477_s30, %s2582_s15  ;;  %s2381_s20 = scalar_lea.hbm %s3056_s1, 256 }
   0xd   : > { %p2577_p7 = pnand %p2239_p6, %p3064_p1  ;;  %p2382_p8 = scmp.ne.s32.totalorder %s3056_s1, %s2381_s20 }
   0xe   : > { %p2388_p12 = scmp.lt.u32.totalorder %s2381_s20, %s3056_s1 }
   0xf   : > { %p2383_p9 = pneg %p2577_p7 }
  0x11   : > { %p2384_p10 = pnand %p2383_p9, %p2382_p8 }
  0x13   : > { %p2385_p11 = pneg %p2384_p10 }
  0x15   : > { %p2390_p13 = pnand %p2388_p12, %p2385_p11 }
  0x17   : > { %2393 = shalt.err (!%p2390_p13)
}
  0x18   : > { %s2394_s25 = scalar_lea.vmem %s245_s13, 256  ;;  %p2402_p6 = scmp.lt.s32.totalorder %s245_s13, %s245_s13 }
  0x19   : > { %p2395_p0 = scmp.ne.s32.totalorder %s245_s13, %s2394_s25  ;;  %p2403_p1 = scmp.lt.s32.totalorder %s2394_s25, %s2394_s25 }
  0x1b   : > { %p2397_p2 = pnand %p2395_p0, %p2383_p9  ;;  %p2404_p4 = por %p2403_p1, %p2402_p6 }
  0x1d   : > { %p2398_p3 = pneg %p2397_p2 }
  0x1f   : > { %p2405_p5 = pnand %p2404_p4, %p2398_p3 }
  0x21   : > { %2408 = shalt.err (!%p2405_p5)
}
  0x22   : > { %s2480_s26 = smov 128   ;;  %s2481_s27 = smov 8  }
  0x23   : > { %2242 = dma.hbm_to_vmem [thread:$0]  (!%p2577_p7), %s3056_s1, 256, %s245_s13, [#allocation6], %s2480_s26, %s2480_s26, %s2481_s27  }
  0x24   : > { %p28_p8 = scmp.eq.s32.totalorder %s27_s17, 0  ;;  %p37_p9 = scmp.ne.s32.totalorder %s2473_s29, %s2469_s28 }
  0x25   : > { %p38_p1 = scmp.eq.s32.totalorder %s2477_s30, 0  ;;  %p2248_p4 = scmp.lt.s32.totalorder %s2477_s30, 2 }
  0x26   : > { %s2608_s19 = scalar_select %p28_p8, %s2473_s29, %s30_s16  }
  0x27   : > { %p39_p5 = por %p38_p1, %p37_p9  ;;  %s273_s20 = sand.u32 1, %s2473_s29  }
  0x28   : > { %s1970_s21 = sshll.u32 %s273_s20, 5  ;;  %s2006_s22 = sshll.u32 %s2477_s30, 9 }
  0x29   : > { %s2615_s25 = scalar_lea.hbm %s3055_s0, %s2006_s22  ;;  %s277_s13 = scalar_lea.vmem [#allocation3], %s1970_s21 }
  0x2a   : > { %s284_s14 = sshll.u32 %s277_s13, 4  ;;  %p2619_p7 = pnand %p2248_p4, %p39_p5  ;;  %s2617_s14 = int_to_ptr.vmem [resolvable:$true] %s284_s14 }
  0x2b   : > { %s2623_s30 = scalar_lea.sflag [#allocation4], %s273_s20  ;;  %s2409_s17 = scalar_lea.hbm %s2615_s25, 512 }
  0x2c   : > { %p2410_p10 = scmp.ne.s32.totalorder %s2615_s25, %s2409_s17  ;;  %p2411_p11 = pneg %p2619_p7 }
  0x2d   : > { %s2414_s12 = scalar_lea.hbm %s3055_s0, 1024  ;;  %p2415_p0 = scmp.lt.u32.totalorder %s2615_s25, %s3055_s0 }
  0x2e   : > { %p2412_p12 = pnand %p2411_p11, %p2410_p10  ;;  %p2416_p2 = scmp.lt.u32.totalorder %s2414_s12, %s2409_s17 }
  0x2f   : > { %p2418_p6 = scmp.lt.u32.totalorder %s2409_s17, %s2615_s25 }
  0x30   : > { %p2413_p13 = pneg %p2412_p12  ;;  %p2417_p3 = por %p2416_p2, %p2415_p0 }
  0x32   : > { %p2419_p8 = por %p2418_p6, %p2417_p3 }
  0x34   : > { %p2420_p9 = pnand %p2419_p8, %p2413_p13 }
  0x36   : > { %2423 = shalt.err (!%p2420_p9)
}
  0x37   : > { %s2424_s20 = scalar_lea.vmem %s2617_s14, 512  ;;  %s2482_s22 = smov [#allocation3]  }
  0x38   : > { %p2425_p1 = scmp.ne.s32.totalorder %s2617_s14, %s2424_s20  ;;  %s2429_s23 = sshll.u32 %s2482_s22, 4  ;;  %s2430_s23 = int_to_ptr.vmem [resolvable:$false] %s2429_s23 }
  0x39   : > { %s2431_s24 = scalar_lea.vmem %s2430_s23, 1024  ;;  %p2432_p10 = scmp.lt.s32.totalorder %s2617_s14, %s2430_s23 }
  0x3a   : > { %p2427_p4 = pnand %p2425_p1, %p2411_p11  ;;  %p2433_p12 = scmp.lt.s32.totalorder %s2431_s24, %s2424_s20 }
  0x3c   : > { %p2428_p5 = pneg %p2427_p4  ;;  %p2434_p0 = por %p2433_p12, %p2432_p10 }
  0x3e   : > { %p2435_p2 = pnand %p2434_p0, %p2428_p5 }
  0x40   : > { %2438 = shalt.err (!%p2435_p2)
}
  0x41   : > { %s2483_s13 = smov 64   ;;  %s2484_s17 = smov 4  }
  0x42   : > { %2246 = dma.hbm_to_vmem [thread:$0]  (!%p2619_p7), %s2615_s25, 512, %s2617_s14, %s2623_s30, %s2483_s13, %s2483_s13, %s2484_s17  }
  0x43   : > { %p3071_p11 = scmp.ne.s32.totalorder %s3068_s11, 0 }
  0x44   : > { %s298_s26 = sand.u32 (!%p3071_p11), 1, %s2469_s28   ;;  %p3072_p13 = scmp.ne.s32.totalorder (!%p3071_p11), %s3067_s10, 0 }
  0x45   : > { %296 = sbr.rel (%p3071_p11) target bundleno = 3513 (0xdb9), region = 48  ;;  %s1974_s27 = sshll.u32 (!%p3071_p11), %s298_s26, 5 }
  0x46   : > { %s299_s12 = scalar_lea.sflag (!%p3071_p11), [#allocation4], %s298_s26  ;;  %s2654_s18 = scalar_lea.vmem (!%p3071_p11), [#allocation3], %s1974_s27 }
  0x4c   : > { %2456 = dma.done.wait (%p3072_p13), %s299_s12, 512  }
  0x4d   : > { %2458 = vsyncadd (%p3072_p13), %s299_s12, 4294966784  ;;  %p3073_p3 = scmp.eq.s32.totalorder %s2557_s9, 0 }
  0x4f   : > { %2460 = dma.done.wait (%p3073_p3), [#allocation6], 256   ;;  %p3074_p7 = pmov %p3073_p3 }
  0x50   : > { %v2485_v0 = vmov 0.0|0.0   ;;  %vm2486_vm0 = vmmov 0   ;;  %v2487_v1 = vmov 0.0   ;;  %v498_v2 = vld [vmem:[%s3058_s3] sm:$0xff]  ;;  %v499_v3 = vld [vmem:[%s3058_s3 + $0x8] sm:$0xff]  ;;  %v500_v4 = vld [vmem:[%s3058_s3 + $0x10] sm:$0xff] }
  0x51   : > { %2462 = vsyncadd (%p3074_p7), [#allocation6], 4294967040  ;;  %2177 = vmatprep.subr.bf16.mxu1 %v2485_v0  ;;  %2079 = vmatprep.mubr.msk.f32.mxu1 %vm2486_vm0, %v2487_v1  ;;  %v2676_v5 = vpack.c.bf16 %v499_v3, %v498_v2  ;;  %v501_v6 = vld [vmem:[%s3058_s3 + $0x18] sm:$0xff]  ;;  %v358_v7 = vld [vmem:[#allocation5] sm:$0xff]  ;;  %vm379_vm1 = vcmask 130048   ;;  %vm489_vm2 = vcmask 257024  }
  0x52   : > { %v359_v8 = vld [vmem:[#allocation5 + $0x8] sm:$0xff]  ;;  %v2299_v10 = vld [vmem:[%s2654_s18] sm:$0xff]   ;;  %v2683_v11 = vpack.c.bf16 %v501_v6, %v500_v4  ;;  %v2301_v13 = vld [vmem:[%s2654_s18 + $0x10] sm:$0xff]   ;;  %vm510_vm3 = vcmask 261120   ;;  %vm1399_vm4 = vcmask 1041409   ;;  %vm1401_vm5 = vcmask 1042434  }
  0x53   : > { %v2173_v9 = vpack.c.bf16 %v359_v8, %v358_v7  ;;  %2179 = vmatpush3.bf16.msra.mxu1 %v2676_v5  ;;  %v2300_v12 = vld [vmem:[%s2654_s18 + $0x8] sm:$0xff]   ;;  %2065 = vmatprep.mubr.msk.f32.mxu0 %vm379_vm1, %v2299_v10  ;;  %v2302_v14 = vld [vmem:[%s2654_s18 + $0x18] sm:$0xff]   ;;  %v1978_v15 = vld [vmem:[%s3057_s2] ss:$0 sm:$0xff]  ;;  %vm1403_vm6 = vcmask 1043459   ;;  %vm1405_vm7 = vcmask 1044484  }
  0x54   : > { %2180 = vmatprep.subr.bf16.mxu1 %v2485_v0  ;;  %v2715_v16 = vld [vmem:[%s3059_s4] ss:$0 sm:$0xff]  ;;  %vm1407_vm8 = vcmask 1045509   ;;  %vm1409_vm9 = vcmask 1046534   ;;  %vm1411_vm10 = vcmask 1047559   ;;  %vm1414_vm11 = vcmask 31744  }
  0x55   : > { %2174 = vmatprep.subr.bf16.mxu0 %v2173_v9  ;;  %s2491_s30 = smov 127   ;;  %p342_p6 = scmp.lt.s32.totalorder %s2557_s9, 1  ;;  %vm1858_vm12 = vcmask 7168  }
  0x56   : > { %2176 = vmatpush3.bf16.msra.mxu0 %v2173_v9 }
  0x57   : > { %2183 = vmatprep.subr.bf16.mxu0 %v2485_v0  ;;  %2182 = vmatpush3.bf16.msra.mxu1 %v2683_v11  ;;  %s3080_s9 = smov (!%p342_p6, %s2557_s9), 1 }
  0x58   : > { %2189 = vmatprep.subr.bf16.mxu1 %v2485_v0  ;;  %s1976_s21 = sshll.u32 %s3080_s9, 3 }
  0x59   : > { %2066 = vmatmul.mubr.msk.f32.vlgmr.msra.gmra.mrb[0].mxu0 %vm379_vm1, %v2300_v12  ;;  %s345_s23 = scalar_lea.vmem %s3062_s7, %s1976_s21  ;;  %s349_s13 = scalar_lea.vmem %s3063_s8, %s1976_s21 }
  0x5a   : > { %2185 = vmatpush3.bf16.msra.mxu0 %v2676_v5  ;;  %2080 = vmatmul.mubr.f32.vlgmr.msra.gmra.mrb[0].mxu1 %v2487_v1 }
  0x5b   : > { %2186 = vmatprep.subr.bf16.mxu0 %v2485_v0  ;;  %2191 = vmatpush3.bf16.msra.mxu1 %v2676_v5 }
  0x5c   : > { %2101 = vmatprep.mubr.msk.f32.mxu1 %vm2486_vm0, %v2487_v1  ;;  %2192 = vmatprep.subr.bf16.mxu1 %v2485_v0 }
  0x5d   : > { %2068 = vmatprep.mubr.msk.f32.mxu0 %vm379_vm1, %v2301_v13 }
  0x5e   : > { %2188 = vmatpush3.bf16.msra.mxu0 %v2683_v11 }
  0x5f   : > { %2195 = vmatprep.subr.bf16.mxu0 %v2485_v0  ;;  %2194 = vmatpush3.bf16.msra.mxu1 %v2683_v11 }
  0x60   : > { %2201 = vmatprep.subr.bf16.mxu1 %v2485_v0  ;;  %2069 = vmatmul.mubr.msk.f32.gmra.mrb[2].mxu0 %vm379_vm1, %v2302_v14 }
  0x61   : > { %2090 = vmatprep.mubr.msk.f32.mxu0 %vm2486_vm0, %v2487_v1 }
 0x12c   : > { %v2067_v17 = vpop.f32.mrb[0].mxu0 }
 0x12d   : > { %v460_v18 = vadd.f32 %v2067_v17, %v1978_v15  ;;  %v454_v19 = vpop.f32.mrb[1].mxu0  ;;  %v580_v20 = vpop.f32.mrb[0].mxu1 }
 0x12e   : > { %v455_v21 = vadd.f32 %v1978_v15, %v454_v19  ;;  %v581_v22 = vadd.f32 %v2715_v16, %v580_v20  ;;  %v2081_v23 = vpop.f32.mrb[1].mxu1 }
 0x12f   : > { %2307 = vtanh.f32 %v460_v18 }
 0x130   : > { %2309 = vtanh.f32 %v455_v21  ;;  %v1984_v24 = vmul.f32 -1.442695, %v581_v22 }
 0x132   : > { %2311 = vpow2.f32 %v1984_v24 }
 0x133   : > { %v2070_v35 = vpop.f32.mrb[2].mxu0 }
 0x134   : > { %v470_v36 = vadd.f32 %v2070_v35, %v1978_v15  ;;  %v464_v37 = vpop.f32.mrb[3].mxu0 }
 0x135   : > { %v465_v38 = vadd.f32 %v1978_v15, %v464_v37  ;;  %v1199_v37 = vld [vmem:[%s3060_s5 + $0x10] sm:$0xff] }
 0x139   : > { %v2308_v25 = vpop.eup %2307 }
 0x13a   : > { %v2310_v26 = vpop.eup %2309  ;;  %v482_v27 = vcombine.high %v2308_v25, %v2308_v25  ;;  %492 = vst.msk [vmem:[#allocation2 + $0x8] sm:$0xf] %vm489_vm2, %v2308_v25 }
 0x13b   : > { %v481_v28 = vcombine.high %v2310_v26, %v2310_v26  ;;  %490 = vst.msk [vmem:[#allocation2] sm:$0xf] %vm489_vm2, %v2310_v26 }
 0x13c   : > { %493 = vst.msk [vmem:[#allocation2 + $0xc] sm:$0xf] %vm489_vm2, %v482_v27  ;;  %v2312_v29 = vpop.eup %2311 }
 0x13d   : > { %491 = vst.msk [vmem:[#allocation2 + $0x4] sm:$0xf] %vm489_vm2, %v481_v28  ;;  %v587_v30 = vadd.f32 1.0, %v2312_v29  ;;  %v1197_v28 = vld [vmem:[%s3060_s5] sm:$0xff]  ;;  %v1198_v29 = vld [vmem:[%s3060_s5 + $0x8] sm:$0xff] }
 0x13f   : > { %2313 = vrcp.f32 %v587_v30  ;;  %v2225_v30 = vpack.c.bf16 %v1198_v29, %v1197_v28  ;;  %v1365_v29 = vlaneseq }
 0x141   : > { %v680_v61 = vld [vmem:[#allocation2 + $0x8] sm:$0xf] }
 0x142   : > { %v503_v31 = vld [vmem:[#allocation2] sm:$0xf] }
 0x143   : > { %v765_v12 = vld [vmem:[#allocation2 + $0xc] sm:$0xf] }
 0x144   : > { %v595_v50 = vld [vmem:[#allocation2 + $0x4] sm:$0xf] }
 0x149   : > { %v2314_v32 = vpop.eup %2313 }
 0x14a   : > { %v590_v33 = vmul.f32 %v2314_v32, %v503_v31 }
 0x14c   : > { %2315 = vtanh.f32 %v590_v33 }
 0x14d   : > { %2317 = vtanh.f32 %v470_v36 }
 0x14e   : > { %2319 = vtanh.f32 %v465_v38  ;;  %v1200_v38 = vld [vmem:[%s3060_s5 + $0x18] sm:$0xff] }
 0x156   : > { %v2316_v34 = vpop.eup %2315 }
 0x157   : > { %593 = vst.msk [vmem:[#allocation2] sm:$0xf] %vm489_vm2, %v2316_v34  ;;  %2091 = vmatmul.mubr.msk.f32.vlgmr.msra.gmra.mrb[4].mxu0 %vm510_vm3, %v2316_v34  ;;  %v2318_v39 = vpop.eup %2317 }
 0x158   : > { %2197 = vmatpush3.bf16.msra.mxu0 %v2676_v5  ;;  %2112 = vmatprep.mubr.msk.f32.mxu0 %vm2486_vm0, %v2487_v1  ;;  %v2320_v40 = vpop.eup %2319  ;;  %v484_v41 = vcombine.high %v2318_v39, %v2318_v39  ;;  %496 = vst.msk [vmem:[#allocation2 + $0x18] sm:$0xf] %vm489_vm2, %v2318_v39  ;;  %v2229_v39 = vpack.c.bf16 %v1200_v38, %v1199_v37 }
 0x159   : > { %2198 = vmatprep.subr.bf16.mxu0 %v2485_v0  ;;  %v483_v42 = vcombine.high %v2320_v40, %v2320_v40  ;;  %494 = vst.msk [vmem:[#allocation2 + $0x10] sm:$0xf] %vm489_vm2, %v2320_v40 }
 0x15a   : > { %497 = vst.msk [vmem:[#allocation2 + $0x1c] sm:$0xf] %vm489_vm2, %v484_v41 }
 0x15b   : > { %495 = vst.msk [vmem:[#allocation2 + $0x14] sm:$0xf] %vm489_vm2, %v483_v42 }
 0x15c   : > { %2200 = vmatpush3.bf16.msra.mxu0 %v2683_v11 }
 0x15d   : > { %2207 = vmatprep.subr.bf16.mxu0 %v2485_v0 }
 0x160   : > { %v850_v24 = vld [vmem:[#allocation2 + $0x10] sm:$0xf] }
 0x162   : > { %v935_v34 = vld [vmem:[#allocation2 + $0x14] sm:$0xf] }
 0x22a   : > { %v665_v43 = vpop.f32.mrb[4].mxu0 }
 0x22b   : > { %v666_v44 = vadd.f32 %v2715_v16, %v665_v43  ;;  %v2092_v45 = vpop.f32.mrb[5].mxu0 }
 0x22d   : > { %v1986_v46 = vmul.f32 -1.442695, %v666_v44  ;;  %v2488_v44 = vmov 0  }
 0x22e   : > { %2295 = vset.pattern.permute.xlu1 %v2488_v44  ;;  %2296 = vset.pattern.permute.xlu0 %v2488_v44 }
 0x22f   : > { %2321 = vpow2.f32 %v1986_v46 }
 0x239   : > { %v2322_v47 = vpop.eup %2321 }
 0x23a   : > { %v672_v48 = vadd.f32 1.0, %v2322_v47 }
 0x23c   : > { %2323 = vrcp.f32 %v672_v48 }
 0x246   : > { %v2324_v49 = vpop.eup %2323 }
 0x247   : > { %v675_v51 = vmul.f32 %v2324_v49, %v595_v50  ;;  %v1999_v49 = vld [vmem:[%s3061_s6] ss:$0 sm:$0xff] }
 0x249   : > { %v676_v52 = vadd.f32 %v675_v51, %v590_v33 }
 0x24b   : > { %2325 = vtanh.f32 %v676_v52 }
 0x255   : > { %v2326_v53 = vpop.eup %2325 }
 0x256   : > { %678 = vst.msk [vmem:[#allocation2 + $0x4] sm:$0xf] %vm489_vm2, %v2326_v53  ;;  %2102 = vmatmul.mubr.msk.f32.vlgmr.msra.gmra.mrb[2].mxu1 %vm510_vm3, %v2326_v53 }
 0x257   : > { %2203 = vmatpush3.bf16.msra.mxu1 %v2676_v5  ;;  %2123 = vmatprep.mubr.msk.f32.mxu1 %vm2486_vm0, %v2487_v1 }
 0x258   : > { %2204 = vmatprep.subr.bf16.mxu1 %v2485_v0 }
 0x25b   : > { %2206 = vmatpush3.bf16.msra.mxu1 %v2683_v11 }
 0x25c   : > { %2213 = vmatprep.subr.bf16.mxu1 %v2485_v0 }
 0x25d   : > { %v2303_v41 = vld [vmem:[#allocation2] sm:$0xff]  }
 0x329   : > { %v750_v54 = vpop.f32.mrb[2].mxu1 }
 0x32a   : > { %v751_v55 = vadd.f32 %v2715_v16, %v750_v54  ;;  %v2103_v56 = vpop.f32.mrb[3].mxu1 }
 0x32c   : > { %v1988_v57 = vmul.f32 -1.442695, %v751_v55 }
 0x32e   : > { %2327 = vpow2.f32 %v1988_v57 }
 0x338   : > { %v2328_v58 = vpop.eup %2327 }
 0x339   : > { %v757_v59 = vadd.f32 1.0, %v2328_v58 }
 0x33b   : > { %2329 = vrcp.f32 %v757_v59 }
 0x345   : > { %v2330_v60 = vpop.eup %2329 }
 0x346   : > { %v760_v62 = vmul.f32 %v2330_v60, %v680_v61 }
 0x348   : > { %v761_v63 = vadd.f32 %v760_v62, %v676_v52 }
 0x34a   : > { %2331 = vtanh.f32 %v761_v63 }
 0x354   : > { %v2332_v2 = vpop.eup %2331 }
 0x355   : > { %763 = vst.msk [vmem:[#allocation2 + $0x8] sm:$0xf] %vm489_vm2, %v2332_v2  ;;  %2113 = vmatmul.mubr.msk.f32.vlgmr.msra.gmra.mrb[6].mxu0 %vm510_vm3, %v2332_v2 }
 0x356   : > { %2209 = vmatpush3.bf16.msra.mxu0 %v2676_v5  ;;  %2134 = vmatprep.mubr.msk.f32.mxu0 %vm2486_vm0, %v2487_v1 }
 0x357   : > { %2210 = vmatprep.subr.bf16.mxu0 %v2485_v0 }
 0x35a   : > { %2212 = vmatpush3.bf16.msra.mxu0 %v2683_v11 }
 0x35b   : > { %2219 = vmatprep.subr.bf16.mxu0 %v2485_v0 }
 0x428   : > { %v835_v3 = vpop.f32.mrb[6].mxu0 }
 0x429   : > { %v836_v4 = vadd.f32 %v2715_v16, %v835_v3  ;;  %v2114_v6 = vpop.f32.mrb[7].mxu0 }
 0x42b   : > { %v1990_v7 = vmul.f32 -1.442695, %v836_v4 }
 0x42d   : > { %2333 = vpow2.f32 %v1990_v7 }
 0x437   : > { %v2334_v8 = vpop.eup %2333 }
 0x438   : > { %v842_v9 = vadd.f32 1.0, %v2334_v8 }
 0x43a   : > { %2335 = vrcp.f32 %v842_v9 }
 0x444   : > { %v2336_v10 = vpop.eup %2335 }
 0x445   : > { %v845_v13 = vmul.f32 %v2336_v10, %v765_v12 }
 0x447   : > { %v846_v14 = vadd.f32 %v845_v13, %v761_v63  ;;  %v1020_v63 = vld [vmem:[#allocation2 + $0x18] sm:$0xf] }
 0x449   : > { %2337 = vtanh.f32 %v846_v14 }
 0x453   : > { %v2338_v15 = vpop.eup %2337 }
 0x454   : > { %848 = vst.msk [vmem:[#allocation2 + $0xc] sm:$0xf] %vm489_vm2, %v2338_v15  ;;  %2124 = vmatmul.mubr.msk.f32.vlgmr.msra.gmra.mrb[4].mxu1 %vm510_vm3, %v2338_v15 }
 0x455   : > { %2215 = vmatpush3.bf16.msra.mxu1 %v2676_v5  ;;  %2145 = vmatprep.mubr.msk.f32.mxu1 %vm2486_vm0, %v2487_v1 }
 0x456   : > { %2216 = vmatprep.subr.bf16.mxu1 %v2485_v0 }
 0x459   : > { %2218 = vmatpush3.bf16.msra.mxu1 %v2683_v11 }
 0x45a   : > { %2226 = vmatprep.subr.bf16.mxu1 %v2225_v30 }
 0x45b   : > { %v2304_v42 = vld [vmem:[#allocation2 + $0x8] sm:$0xff]  }
 0x527   : > { %v920_v17 = vpop.f32.mrb[4].mxu1 }
 0x528   : > { %v921_v18 = vadd.f32 %v2715_v16, %v920_v17  ;;  %v2125_v19 = vpop.f32.mrb[5].mxu1 }
 0x52a   : > { %v1992_v20 = vmul.f32 -1.442695, %v921_v18 }
 0x52c   : > { %2339 = vpow2.f32 %v1992_v20 }
 0x536   : > { %v2340_v21 = vpop.eup %2339 }
 0x537   : > { %v927_v22 = vadd.f32 1.0, %v2340_v21 }
 0x539   : > { %2341 = vrcp.f32 %v927_v22 }
 0x543   : > { %v2342_v23 = vpop.eup %2341 }
 0x544   : > { %v930_v25 = vmul.f32 %v2342_v23, %v850_v24 }
 0x546   : > { %v931_v26 = vadd.f32 %v930_v25, %v846_v14  ;;  %v1105_v14 = vld [vmem:[#allocation2 + $0x1c] sm:$0xf] }
 0x548   : > { %2343 = vtanh.f32 %v931_v26 }
 0x552   : > { %v2344_v27 = vpop.eup %2343 }
 0x553   : > { %933 = vst.msk [vmem:[#allocation2 + $0x10] sm:$0xf] %vm489_vm2, %v2344_v27  ;;  %2135 = vmatmul.mubr.msk.f32.vlgmr.msra.gmra.mrb[8].mxu0 %vm510_vm3, %v2344_v27 }
 0x554   : > { %2221 = vmatpush3.bf16.msra.mxu0 %v2676_v5  ;;  %2156 = vmatprep.mubr.msk.f32.mxu0 %vm2486_vm0, %v2487_v1 }
 0x555   : > { %2222 = vmatprep.subr.bf16.mxu0 %v2485_v0 }
 0x558   : > { %2224 = vmatpush3.bf16.msra.mxu0 %v2683_v11 }
 0x626   : > { %v1005_v31 = vpop.f32.mrb[8].mxu0 }
 0x627   : > { %v1006_v5 = vadd.f32 %v2715_v16, %v1005_v31  ;;  %v2136_v32 = vpop.f32.mrb[9].mxu0  ;;  %v1366_v31 = vand.u32 127, %v1365_v29 }
 0x629   : > { %v1994_v33 = vmul.f32 -1.442695, %v1006_v5  ;;  %v2851_v5 = vshrl.u32 %v1365_v29, 7 }
 0x62b   : > { %2345 = vpow2.f32 %v1994_v33  ;;  %v2854_v33 = vsub.s32 %v1366_v31, %v2851_v5  ;;  %v1464_v29 = vsub.s32 4, %v2851_v5  ;;  %v1471_v31 = vsub.s32 5, %v2851_v5 }
 0x635   : > { %v2346_v1 = vpop.eup %2345 }
 0x636   : > { %v1012_v0 = vadd.f32 1.0, %v2346_v1 }
 0x638   : > { %2347 = vrcp.f32 %v1012_v0 }
 0x642   : > { %v2348_v11 = vpop.eup %2347 }
 0x643   : > { %v1015_v35 = vmul.f32 %v2348_v11, %v935_v34 }
 0x645   : > { %v1016_v36 = vadd.f32 %v1015_v35, %v931_v26 }
 0x647   : > { %2349 = vtanh.f32 %v1016_v36 }
 0x651   : > { %v2350_v40 = vpop.eup %2349 }
 0x652   : > { %1018 = vst.msk [vmem:[#allocation2 + $0x14] sm:$0xf] %vm489_vm2, %v2350_v40  ;;  %2146 = vmatmul.mubr.msk.f32.vlgmr.msra.gmra.mrb[6].mxu1 %vm510_vm3, %v2350_v40 }
 0x653   : > { %2228 = vmatpush3.bf16.msra.mxu1 %v2225_v30  ;;  %2167 = vmatprep.mubr.msk.f32.mxu1 %vm510_vm3, %v2303_v41 }
 0x654   : > { %2230 = vmatprep.subr.bf16.mxu1 %v2229_v39 }
 0x657   : > { %2232 = vmatpush3.bf16.msra.mxu1 %v2229_v39 }
 0x659   : > { %v2305_v43 = vld [vmem:[#allocation2 + $0x10] sm:$0xff]  }
 0x65a   : > { %2168 = vmatmul.mubr.msk.f32.vlgmr.msra.gmra.mrb[8].mxu1 %vm510_vm3, %v2304_v42 }
 0x65b   : > { %2170 = vmatprep.mubr.msk.f32.mxu1 %vm510_vm3, %v2305_v43 }
 0x725   : > { %v1090_v45 = vpop.f32.mrb[6].mxu1 }
 0x726   : > { %v1091_v46 = vadd.f32 %v2715_v16, %v1090_v45  ;;  %v2147_v47 = vpop.f32.mrb[7].mxu1 }
 0x728   : > { %v1996_v48 = vmul.f32 -1.442695, %v1091_v46 }
 0x72a   : > { %2351 = vpow2.f32 %v1996_v48 }
 0x72d   : > { %v2169_v50 = vpop.f32.mrb[8].mxu1 }
 0x72e   : > { %v2790_v51 = vadd.f32 %v2169_v50, %v1999_v49  ;;  %v1294_v52 = vpop.f32.mrb[9].mxu1 }
 0x72f   : > { %v2792_v53 = vadd.f32 %v1999_v49, %v1294_v52 }
 0x730   : > { %v2795_v54 = vmul.f32 0.03125, %v2790_v51  ;;  %v2799_v55 = vcombine.high %v2790_v51, %v2790_v51 }
 0x731   : > { %v2802_v56 = vmul.f32 0.03125, %v2792_v53  ;;  %v2806_v57 = vcombine.high %v2792_v53, %v2792_v53 }
 0x732   : > { %1348 = vperm.xlu1 %2295, %v2795_v54   ;;  %v2811_v59 = vmul.f32 0.03125, %v2799_v55 }
 0x733   : > { %1342 = vperm.xlu0 %2296, %v2802_v56   ;;  %v2814_v61 = vmul.f32 0.03125, %v2806_v57 }
 0x734   : > { %v2352_v58 = vpop.eup %2351 }
 0x735   : > { %v1097_v60 = vadd.f32 1.0, %v2352_v58 }
 0x736   : > { %1351 = vperm.xlu1 %2295, %v2811_v59  }
 0x737   : > { %2353 = vrcp.f32 %v1097_v60  ;;  %1345 = vperm.xlu0 %2296, %v2814_v61   ;;  %v2489_v60 = vmov 839922192  }
 0x741   : > { %v2354_v62 = vpop.eup %2353 }
 0x742   : > { %v1100_v2 = vmul.f32 %v2354_v62, %v1020_v63  ;;  %v1420_v62 = vunpack.c.l.s4 %v2489_v60  ;;  %v2490_v63 = vmov 1985246804  }
 0x744   : > { %v1101_v3 = vadd.f32 %v1100_v2, %v1016_v36  ;;  %v1427_v2 = vunpack.c.l.s4 %v2490_v63 }
 0x746   : > { %2355 = vtanh.f32 %v1101_v3 }
 0x750   : > { %v2356_v4 = vpop.eup %2355 }
 0x751   : > { %1103 = vst.msk [vmem:[#allocation2 + $0x18] sm:$0xf] %vm489_vm2, %v2356_v4  ;;  %2157 = vmatmul.mubr.msk.f32.vlgmr.msra.gmra.mrb[10].mxu0 %vm510_vm3, %v2356_v4  ;;  %v1428_v4 = vunpack.c.0.s8 %v1427_v2 }
 0x7b1   : > { %v1349_v1 = vpop.permute.xlu1 %1348 }
 0x7b2   : > { %v1343_v30 = vpop.permute.xlu0 %1342  ;;  %v1378_v35 = vrot.slane %v1349_v1, %v2854_v33  ;;  %v1478_v1 = vsub.s32 6, %v2851_v5 }
 0x7b3   : > { %v1370_v11 = vrot.slane %v1343_v30, %v2854_v33 }
 0x7b5   : > { %v1352_v36 = vpop.permute.xlu1 %1351 }
 0x7b6   : > { %v1346_v32 = vpop.permute.xlu0 %1345  ;;  %v1382_v38 = vrot.slane %v1352_v36, %v2854_v33 }
 0x7b7   : > { %v1374_v0 = vrot.slane %v1346_v32, %v2854_v33 }
 0x7b9   : > { %v1400_v34 = vsel %vm1399_vm4, %v1374_v0, %v1370_v11  ;;  %v1485_v11 = vsub.s32 7, %v2851_v5 }
 0x7ba   : > { %v1402_v37 = vsel %vm1401_vm5, %v1378_v35, %v1400_v34 }
 0x7bb   : > { %v1404_v41 = vsel %vm1403_vm6, %v1382_v38, %v1402_v37 }
 0x824   : > { %v1175_v6 = vpop.f32.mrb[10].mxu0 }
 0x825   : > { %v1176_v7 = vadd.f32 %v2715_v16, %v1175_v6  ;;  %v2158_v8 = vpop.f32.mrb[11].mxu0 }
 0x827   : > { %v1998_v9 = vmul.f32 -1.442695, %v1176_v7  ;;  %v2876_v7 = vsub.s32 %v1428_v4, %v2851_v5 }
 0x829   : > { %2357 = vpow2.f32 %v1998_v9 }
 0x833   : > { %v2358_v10 = vpop.eup %2357 }
 0x834   : > { %v1182_v12 = vadd.f32 1.0, %v2358_v10 }
 0x836   : > { %2359 = vrcp.f32 %v1182_v12  ;;  %v1436_v12 = vsub.s32 0, %v2851_v5 }
 0x840   : > { %v2360_v13 = vpop.eup %2359 }
 0x841   : > { %v1185_v15 = vmul.f32 %v2360_v13, %v1105_v14 }
 0x843   : > { %v1186_v17 = vadd.f32 %v1185_v15, %v1101_v3  ;;  %v1421_v3 = vunpack.c.0.s8 %v1420_v62  ;;  %v1443_v15 = vsub.s32 1, %v2851_v5 }
 0x845   : > { %2361 = vtanh.f32 %v1186_v17  ;;  %v2873_v6 = vsub.s32 %v1421_v3, %v2851_v5 }
 0x84f   : > { %v2362_v18 = vpop.eup %2361 }
 0x850   : > { %1188 = vst.msk [vmem:[#allocation2 + $0x1c] sm:$0xf] %vm489_vm2, %v2362_v18  ;;  %v1450_v18 = vsub.s32 2, %v2851_v5 }
 0x857   : > { %v2306_v19 = vld [vmem:[#allocation2 + $0x18] sm:$0xff]  }
 0x858   : > { %2171 = vmatmul.mubr.msk.f32.gmra.mrb[10].mxu1 %vm510_vm3, %v2306_v19 }
 0x92b   : > { %v2172_v20 = vpop.f32.mrb[10].mxu1 }
 0x92c   : > { %v1304_v21 = vpop.f32.mrb[11].mxu1  ;;  %v2823_v16 = vadd.f32 %v2172_v20, %v1999_v49  ;;  %v1457_v20 = vsub.s32 3, %v2851_v5 }
 0x92d   : > { %v2825_v22 = vadd.f32 %v1999_v49, %v1304_v21 }
 0x92e   : > { %v2840_v26 = vcombine.high %v2823_v16, %v2823_v16  ;;  %v2844_v27 = vmul.f32 0.03125, %v2823_v16 }
 0x92f   : > { %v2828_v23 = vmul.f32 0.03125, %v2825_v22  ;;  %v2832_v24 = vcombine.high %v2825_v22, %v2825_v22 }
 0x930   : > { %v2848_v28 = vmul.f32 0.03125, %v2840_v26 }
 0x931   : > { %1354 = vperm.xlu0 %2296, %v2828_v23   ;;  %v2836_v25 = vmul.f32 0.03125, %v2832_v24 }
 0x933   : > { %1357 = vperm.xlu1 %2295, %v2836_v25  }
 0x935   : > { %1360 = vperm.xlu0 %2296, %v2844_v27  }
 0x937   : > { %1363 = vperm.xlu1 %2295, %v2848_v28  }
 0x9b0   : > { %v1355_v39 = vpop.permute.xlu0 %1354 }
 0x9b1   : > { %v1386_v40 = vrot.slane %v1355_v39, %v2854_v33 }
 0x9b2   : > { %v1358_v42 = vpop.permute.xlu1 %1357 }
 0x9b3   : > { %v1406_v43 = vsel %vm1405_vm7, %v1386_v40, %v1404_v41  ;;  %v1390_v44 = vrot.slane %v1358_v42, %v2854_v33 }
 0x9b4   : > { %v1361_v45 = vpop.permute.xlu0 %1360 }
 0x9b5   : > { %v1408_v46 = vsel %vm1407_vm8, %v1390_v44, %v1406_v43  ;;  %v1394_v47 = vrot.slane %v1361_v45, %v2854_v33 }
 0x9b6   : > { %v1364_v48 = vpop.permute.xlu1 %1363 }
 0x9b7   : > { %v1398_v49 = vrot.slane %v1364_v48, %v2854_v33  ;;  %v1410_v50 = vsel %vm1409_vm9, %v1394_v47, %v1408_v46 }
 0x9b9   : > { %v1412_v52 = vsel %vm1411_vm10, %v1398_v49, %v1410_v50 }
 0x9ba   : > { %v1415_v58 = vsel %vm1414_vm11, %v1412_v52, -inf }
 0x9bb   : > { %1416 = vmax.xlane.f32.xlu0 %v1415_v58 }
 0xa48   : > { %v1417_v8 = vpop.xlane.xlu0 %1416 }
 0xa49   : > { %v1425_v9 = vrot.slane %v1417_v8, %v2873_v6  ;;  %v1432_v10 = vrot.slane %v1417_v8, %v2876_v7 }
 0xa4b   : > { %v1433_v13 = vcombine.low %v1425_v9, %v1432_v10 }
 0xa4d   : > { %v1437_v14 = vrot.slane %v1433_v13, %v1436_v12  ;;  %v1444_v17 = vrot.slane %v1433_v13, %v1443_v15  ;;  %v1451_v19 = vrot.slane %v1433_v13, %v1450_v18  ;;  %v1458_v21 = vrot.slane %v1433_v13, %v1457_v20 }
 0xa4e   : > { %v1465_v30 = vrot.slane %v1433_v13, %v1464_v29  ;;  %v1472_v32 = vrot.slane %v1433_v13, %v1471_v31  ;;  %v1479_v0 = vrot.slane %v1433_v13, %v1478_v1  ;;  %v1486_v34 = vrot.slane %v1433_v13, %v1485_v11 }
 0xa4f   : > { %1439 = vbcast.lane.b32.xlu1 %v1437_v14, 256 }
 0xa53   : > { %1446 = vbcast.lane.b32.xlu1 %v1444_v17, 256 }
 0xa57   : > { %1453 = vbcast.lane.b32.xlu1 %v1451_v19, 256 }
 0xa5b   : > { %1460 = vbcast.lane.b32.xlu1 %v1458_v21, 256 }
 0xa5f   : > { %1467 = vbcast.lane.b32.xlu1 %v1465_v30, 256 }
 0xa63   : > { %1474 = vbcast.lane.b32.xlu1 %v1472_v32, 256 }
 0xa67   : > { %1481 = vbcast.lane.b32.xlu1 %v1479_v0, 256 }
 0xa6b   : > { %1488 = vbcast.lane.b32.xlu1 %v1486_v34, 256 }
 0xac1   : > { %v1440_v35 = vpop.permute.xlu1 %1439 }
 0xac2   : > { %v1498_v36 = vsub.f32 %v2802_v56, %v1440_v35 }
 0xac4   : > { %v1506_v37 = vmul.f32 1.442695, %v1498_v36 }
 0xac5   : > { %v1447_v38 = vpop.permute.xlu1 %1446 }
 0xac6   : > { %2363 = vpow2.f32 %v1506_v37  ;;  %v1499_v39 = vsub.f32 %v2814_v61, %v1447_v38 }
 0xac8   : > { %v1508_v40 = vmul.f32 1.442695, %v1499_v39 }
 0xac9   : > { %v1454_v41 = vpop.permute.xlu1 %1453 }
 0xaca   : > { %2365 = vpow2.f32 %v1508_v40  ;;  %v1500_v42 = vsub.f32 %v2795_v54, %v1454_v41 }
 0xacc   : > { %v1510_v43 = vmul.f32 1.442695, %v1500_v42 }
 0xacd   : > { %v1461_v44 = vpop.permute.xlu1 %1460 }
 0xace   : > { %2367 = vpow2.f32 %v1510_v43  ;;  %v1501_v45 = vsub.f32 %v2811_v59, %v1461_v44 }
 0xad0   : > { %v2908_v46 = vpop.eup %2363  ;;  %v1512_v47 = vmul.f32 1.442695, %v1501_v45 }
 0xad1   : > { %1531 = vperm.xlu0 %2296, %v2908_v46   ;;  %v1468_v56 = vpop.permute.xlu1 %1467 }
 0xad2   : > { %2369 = vpow2.f32 %v1512_v47  ;;  %v1502_v48 = vsub.f32 %v2828_v23, %v1468_v56 }
 0xad4   : > { %v2912_v61 = vpop.eup %2365  ;;  %v1514_v49 = vmul.f32 1.442695, %v1502_v48 }
 0xad5   : > { %1534 = vperm.xlu1 %2295, %v2912_v61   ;;  %v1475_v54 = vpop.permute.xlu1 %1474 }
 0xad6   : > { %2371 = vpow2.f32 %v1514_v49  ;;  %v1503_v50 = vsub.f32 %v2836_v25, %v1475_v54 }
 0xad8   : > { %v2916_v52 = vpop.eup %2367  ;;  %v1516_v59 = vmul.f32 1.442695, %v1503_v50 }
 0xad9   : > { %1537 = vperm.xlu1 %2295, %v2916_v52   ;;  %v1482_v58 = vpop.permute.xlu1 %1481 }
 0xada   : > { %2373 = vpow2.f32 %v1516_v59  ;;  %v1504_v60 = vsub.f32 %v2844_v27, %v1482_v58 }
 0xadc   : > { %v2920_v62 = vpop.eup %2369  ;;  %v1518_v23 = vmul.f32 1.442695, %v1504_v60 }
 0xadd   : > { %1540 = vperm.xlu1 %2295, %v2920_v62   ;;  %v1489_v63 = vpop.permute.xlu1 %1488 }
 0xade   : > { %2375 = vpow2.f32 %v1518_v23  ;;  %v1505_v2 = vsub.f32 %v2848_v28, %v1489_v63 }
 0xae0   : > { %v2924_v3 = vpop.eup %2371  ;;  %v1520_v25 = vmul.f32 1.442695, %v1505_v2 }
 0xae1   : > { %1543 = vperm.xlu1 %2295, %v2924_v3  }
 0xae2   : > { %2377 = vpow2.f32 %v1520_v25 }
 0xae4   : > { %v2927_v4 = vpop.eup %2373 }
 0xae5   : > { %1546 = vperm.xlu1 %2295, %v2927_v4  }
 0xae8   : > { %v2930_v27 = vpop.eup %2375 }
 0xae9   : > { %1549 = vperm.xlu1 %2295, %v2930_v27  }
 0xaec   : > { %v2933_v8 = vpop.eup %2377 }
 0xaed   : > { %1552 = vperm.xlu0 %2296, %v2933_v8  }
 0xaf1   : > { %1686 = vrot.lane.b32.xlu0 %v2792_v53, %s2491_s30 }
 0xaf5   : > { %1688 = vrot.lane.b32.xlu0 %v2806_v57, %s2491_s30 }
 0xaf9   : > { %1690 = vrot.lane.b32.xlu0 %v2790_v51, %s2491_s30 }
 0xafd   : > { %1694 = vrot.lane.b32.xlu0 %v2825_v22, %s2491_s30 }
 0xb01   : > { %1696 = vrot.lane.b32.xlu0 %v2832_v24, %s2491_s30 }
 0xb50   : > { %v1532_v14 = vpop.permute.xlu0 %1531 }
 0xb51   : > { %v1557_v30 = vrot.slane %v1532_v14, %v2854_v33 }
 0xb54   : > { %v1535_v28 = vpop.permute.xlu1 %1534 }
 0xb55   : > { %v1561_v19 = vrot.slane %v1535_v28, %v2854_v33 }
 0xb57   : > { %v1586_v35 = vsel %vm1399_vm4, %v1561_v19, %v1557_v30 }
 0xb58   : > { %v1538_v9 = vpop.permute.xlu1 %1537 }
 0xb59   : > { %v1565_v21 = vrot.slane %v1538_v9, %v2854_v33 }
 0xb5b   : > { %v1587_v37 = vsel %vm1401_vm5, %v1565_v21, %v1586_v35 }
 0xb5c   : > { %v1541_v10 = vpop.permute.xlu1 %1540 }
 0xb5d   : > { %v1569_v32 = vrot.slane %v1541_v10, %v2854_v33 }
 0xb5f   : > { %v1588_v39 = vsel %vm1403_vm6, %v1569_v32, %v1587_v37 }
 0xb60   : > { %v1544_v13 = vpop.permute.xlu1 %1543 }
 0xb61   : > { %v1573_v0 = vrot.slane %v1544_v13, %v2854_v33 }
 0xb63   : > { %v1589_v40 = vsel %vm1405_vm7, %v1573_v0, %v1588_v39 }
 0xb64   : > { %v1547_v17 = vpop.permute.xlu1 %1546 }
 0xb65   : > { %v1577_v36 = vrot.slane %v1547_v17, %v2854_v33 }
 0xb67   : > { %v1590_v42 = vsel %vm1407_vm8, %v1577_v36, %v1589_v40 }
 0xb68   : > { %v1550_v34 = vpop.permute.xlu1 %1549 }
 0xb69   : > { %v1581_v38 = vrot.slane %v1550_v34, %v2854_v33 }
 0xb6b   : > { %v1591_v44 = vsel %vm1409_vm9, %v1581_v38, %v1590_v42 }
 0xb6c   : > { %v1553_v41 = vpop.permute.xlu0 %1552 }
 0xb6d   : > { %v1585_v43 = vrot.slane %v1553_v41, %v2854_v33 }
 0xb6f   : > { %v1592_v45 = vsel %vm1411_vm10, %v1585_v43, %v1591_v44 }
 0xb70   : > { %v1594_v47 = vsel %vm1414_vm11, %v1592_v45, 0.0 }
 0xb71   : > { %1595 = vadd.xlane.f32.xlu1 %v1594_v47 }
 0xb82   : > { %1692 = vrot.lane.b32.xlu1 %v2799_v55, %s2491_s30 }
 0xb86   : > { %1700 = vrot.lane.b32.xlu1 %v2840_v26, %s2491_s30 }
 0xbfe   : > { %v1596_v56 = vpop.xlane.xlu1 %1595 }
 0xbff   : > { %2379 = vrcp.f32 %v1596_v56 }
 0xc02   : > { %v1693_v19 = vpop.permute.xlu1 %1692 }
 0xc06   : > { %v1701_v37 = vpop.permute.xlu1 %1700 }
 0xc09   : > { %v2380_v48 = vpop.eup %2379 }
 0xc0a   : > { %v1605_v49 = vrot.slane %v2380_v48, %v2873_v6  ;;  %v1612_v54 = vrot.slane %v2380_v48, %v2876_v7 }
 0xc0c   : > { %v1613_v50 = vcombine.low %v1605_v49, %v1612_v54 }
 0xc0e   : > { %v1617_v59 = vrot.slane %v1613_v50, %v1436_v12  ;;  %v1624_v58 = vrot.slane %v1613_v50, %v1443_v15  ;;  %v1631_v60 = vrot.slane %v1613_v50, %v1450_v18  ;;  %v1638_v23 = vrot.slane %v1613_v50, %v1457_v20  ;;  %v1687_v18 = vpop.permute.xlu0 %1686 }
 0xc0f   : > { %v1645_v6 = vrot.slane %v1613_v50, %v1464_v29  ;;  %v1652_v7 = vrot.slane %v1613_v50, %v1471_v31  ;;  %v1659_v12 = vrot.slane %v1613_v50, %v1478_v1  ;;  %v1666_v15 = vrot.slane %v1613_v50, %v1485_v11 }
 0xc10   : > { %1619 = vbcast.lane.b32.xlu0 %v1617_v59, 256 }
 0xc12   : > { %v1689_v20 = vpop.permute.xlu0 %1688 }
 0xc14   : > { %1626 = vbcast.lane.b32.xlu0 %v1624_v58, 256 }
 0xc16   : > { %v1691_v63 = vpop.permute.xlu0 %1690 }
 0xc18   : > { %1633 = vbcast.lane.b32.xlu0 %v1631_v60, 256 }
 0xc1a   : > { %v1695_v29 = vpop.permute.xlu0 %1694 }
 0xc1c   : > { %1640 = vbcast.lane.b32.xlu0 %v1638_v23, 256 }
 0xc1e   : > { %v1697_v2 = vpop.permute.xlu0 %1696 }
 0xc20   : > { %1647 = vbcast.lane.b32.xlu0 %v1645_v6, 256 }
 0xc24   : > { %1654 = vbcast.lane.b32.xlu0 %v1652_v7, 256 }
 0xc28   : > { %1661 = vbcast.lane.b32.xlu0 %v1659_v12, 256 }
 0xc2c   : > { %1668 = vbcast.lane.b32.xlu0 %v1666_v15, 256 }
 0xc30   : > { %1698 = vrot.lane.b32.xlu0 %v2823_v16, %s2491_s30 }
 0xc82   : > { %v1620_v25 = vpop.permute.xlu0 %1619 }
 0xc83   : > { %v1678_v31 = vmul.f32 %v2908_v46, %v1620_v25 }
 0xc85   : > { %v1710_v28 = vmul.f32 %v1687_v18, %v1678_v31 }
 0xc86   : > { %v1627_v9 = vpop.permute.xlu0 %1626 }
 0xc87   : > { %v1679_v1 = vmul.f32 %v2912_v61, %v1627_v9  ;;  %1727 = vperm.xlu0 %2296, %v1710_v28  }
 0xc89   : > { %v1711_v10 = vmul.f32 %v1689_v20, %v1679_v1 }
 0xc8a   : > { %v1634_v5 = vpop.permute.xlu0 %1633 }
 0xc8b   : > { %v1680_v11 = vmul.f32 %v2916_v52, %v1634_v5  ;;  %1730 = vperm.xlu1 %2295, %v1711_v10  }
 0xc8d   : > { %v1712_v13 = vmul.f32 %v1691_v63, %v1680_v11 }
 0xc8e   : > { %v1641_v14 = vpop.permute.xlu0 %1640 }
 0xc8f   : > { %v1681_v17 = vmul.f32 %v2920_v62, %v1641_v14  ;;  %1733 = vperm.xlu0 %2296, %v1712_v13  }
 0xc91   : > { %v1713_v21 = vmul.f32 %v1693_v19, %v1681_v17 }
 0xc92   : > { %v1648_v30 = vpop.permute.xlu0 %1647 }
 0xc93   : > { %v1682_v46 = vmul.f32 %v2924_v3, %v1648_v30  ;;  %1736 = vperm.xlu1 %2295, %v1713_v21   ;;  %v2492_v3 = vmov 1  }
 0xc95   : > { %v1714_v32 = vmul.f32 %v1695_v29, %v1682_v46 }
 0xc96   : > { %v1655_v0 = vpop.permute.xlu0 %1654 }
 0xc97   : > { %v1683_v61 = vmul.f32 %v2927_v4, %v1655_v0  ;;  %1739 = vperm.xlu0 %2296, %v1714_v32  }
 0xc99   : > { %v1715_v34 = vmul.f32 %v1697_v2, %v1683_v61 }
 0xc9a   : > { %v1662_v35 = vpop.permute.xlu0 %1661 }
 0xc9b   : > { %1742 = vperm.xlu1 %2295, %v1715_v34   ;;  %v1684_v62 = vmul.f32 %v2930_v27, %v1662_v35 }
 0xc9e   : > { %v1669_v52 = vpop.permute.xlu0 %1668 }
 0xc9f   : > { %v1685_v36 = vmul.f32 %v2933_v8, %v1669_v52 }
 0xca1   : > { %v1717_v38 = vmul.f32 %v1701_v37, %v1685_v36 }
 0xca2   : > { %v1699_v39 = vpop.permute.xlu0 %1698 }
 0xca3   : > { %v1716_v40 = vmul.f32 %v1699_v39, %v1684_v62  ;;  %1748 = vperm.xlu1 %2295, %v1717_v38  }
 0xca5   : > { %1745 = vperm.xlu0 %2296, %v1716_v40  }
 0xca7   : > { %2298 = vset.pattern.permute.xlu1 %v2492_v3 }
 0xca8   : > { %1797 = vperm.xlu1 %2298, %v2806_v57  }
 0xca9   : > { %2297 = vset.pattern.permute.xlu0 %v2492_v3 }
 0xcaa   : > { %1794 = vperm.xlu0 %2297, %v2792_v53  }
 0xcac   : > { %1800 = vperm.xlu1 %2298, %v2790_v51  }
 0xcb0   : > { %1803 = vperm.xlu1 %2298, %v2799_v55  }
 0xcb4   : > { %1806 = vperm.xlu1 %2298, %v2825_v22  }
 0xcb8   : > { %1809 = vperm.xlu1 %2298, %v2832_v24  }
 0xcbc   : > { %1812 = vperm.xlu1 %2298, %v2823_v16  }
 0xcc0   : > { %1815 = vperm.xlu1 %2298, %v2840_v26  }
 0xd06   : > { %v1728_v4 = vpop.permute.xlu0 %1727 }
 0xd07   : > { %v1753_v55 = vrot.slane %v1728_v4, %v2854_v33 }
 0xd0a   : > { %v1731_v27 = vpop.permute.xlu1 %1730 }
 0xd0b   : > { %v1757_v57 = vrot.slane %v1731_v27, %v2854_v33 }
 0xd0d   : > { %v1782_v16 = vsel %vm1399_vm4, %v1757_v57, %v1753_v55 }
 0xd0e   : > { %v1734_v8 = vpop.permute.xlu0 %1733 }
 0xd0f   : > { %v1761_v51 = vrot.slane %v1734_v8, %v2854_v33 }
 0xd11   : > { %v1783_v44 = vsel %vm1401_vm5, %v1761_v51, %v1782_v16 }
 0xd12   : > { %v1737_v41 = vpop.permute.xlu1 %1736 }
 0xd13   : > { %v1765_v22 = vrot.slane %v1737_v41, %v2854_v33 }
 0xd15   : > { %v1784_v45 = vsel %vm1403_vm6, %v1765_v22, %v1783_v44 }
 0xd16   : > { %v1740_v42 = vpop.permute.xlu0 %1739 }
 0xd17   : > { %v1769_v24 = vrot.slane %v1740_v42, %v2854_v33 }
 0xd19   : > { %v1785_v56 = vsel %vm1405_vm7, %v1769_v24, %v1784_v45 }
 0xd1a   : > { %v1743_v53 = vpop.permute.xlu1 %1742 }
 0xd1b   : > { %v1773_v26 = vrot.slane %v1743_v53, %v2854_v33 }
 0xd1d   : > { %v1786_v49 = vsel %vm1407_vm8, %v1773_v26, %v1785_v56 }
 0xd22   : > { %v1749_v43 = vpop.permute.xlu1 %1748 }
 0xd23   : > { %v1781_v54 = vrot.slane %v1749_v43, %v2854_v33 }
 0xd24   : > { %v1746_v47 = vpop.permute.xlu0 %1745 }
 0xd25   : > { %v1777_v48 = vrot.slane %v1746_v47, %v2854_v33 }
 0xd27   : > { %v1798_v50 = vpop.permute.xlu1 %1797  ;;  %v1787_v59 = vsel %vm1409_vm9, %v1777_v48, %v1786_v49 }
 0xd28   : > { %v1788_v58 = vsel %vm1411_vm10, %v1781_v54, %v1787_v59  ;;  %v1824_v20 = vrot.slane %v1798_v50, %v2854_v33 }
 0xd29   : > { %v1790_v60 = vsel %vm1414_vm11, %v1788_v58, 0.0  ;;  %v1795_v7 = vpop.permute.xlu0 %1794 }
 0xd2a   : > { %1791 = vadd.xlane.f32.xlu0 %v1790_v60  ;;  %v1820_v15 = vrot.slane %v1795_v7, %v2854_v33 }
 0xd2b   : > { %v1801_v23 = vpop.permute.xlu1 %1800 }
 0xd2c   : > { %v1828_v63 = vrot.slane %v1801_v23, %v2854_v33  ;;  %v1849_v29 = vsel %vm1399_vm4, %v1824_v20, %v1820_v15 }
 0xd2e   : > { %v1850_v9 = vsel %vm1401_vm5, %v1828_v63, %v1849_v29 }
 0xd2f   : > { %v1804_v6 = vpop.permute.xlu1 %1803 }
 0xd30   : > { %v1832_v2 = vrot.slane %v1804_v6, %v2854_v33 }
 0xd32   : > { %v1851_v10 = vsel %vm1403_vm6, %v1832_v2, %v1850_v9 }
 0xd33   : > { %v1807_v12 = vpop.permute.xlu1 %1806 }
 0xd34   : > { %v1836_v25 = vrot.slane %v1807_v12, %v2854_v33 }
 0xd36   : > { %v1852_v5 = vsel %vm1405_vm7, %v1836_v25, %v1851_v10 }
 0xd37   : > { %v1810_v18 = vpop.permute.xlu1 %1809 }
 0xd38   : > { %v1840_v28 = vrot.slane %v1810_v18, %v2854_v33 }
 0xd3a   : > { %v1853_v13 = vsel %vm1407_vm8, %v1840_v28, %v1852_v5 }
 0xd3b   : > { %v1813_v31 = vpop.permute.xlu1 %1812 }
 0xd3c   : > { %v1844_v1 = vrot.slane %v1813_v31, %v2854_v33 }
 0xd3e   : > { %v1854_v17 = vsel %vm1409_vm9, %v1844_v1, %v1853_v13 }
 0xd3f   : > { %v1816_v11 = vpop.permute.xlu1 %1815 }
 0xd40   : > { %v1848_v14 = vrot.slane %v1816_v11, %v2854_v33 }
 0xd42   : > { %v1855_v19 = vsel %vm1411_vm10, %v1848_v14, %v1854_v17 }
 0xd43   : > { %1857 = vst.msk [vmem:[%s345_s23] sm:$0xff] %vm1414_vm11, %v1855_v19 }
 0xdb7   : > { %v1792_v21 = vpop.xlane.xlu0 %1791 }
 0xdb8   : > { %1859 = vst.msk [vmem:[%s349_s13] sm:$0xff] %vm1858_vm12, %v1792_v21 }
 0xdb9 PF: > { %p20_p8 = scmp.ge.s32.totalorder %s2582_s15, 4   ;;  %s3075_s27 = smov %s2469_s28 }
 0xdba   : > { %s3076_s28 = smov %s2473_s29  ;;  %s3077_s29 = smov %s2608_s19 }
 0xdbb   : > { %s3078_s30 = smov %s2582_s15  ;;  %22 = sbr.rel (!%p20_p8) target bundleno = 4 (0x4), region = 111 }
 0xdc2   :  { %1893 = vsyncpa [#allocation4], 1 }
 0xdc3   :  { %1895 = vsyncpa [#allocation4 + $0x1], 1 }
 0xdc4   :  { %1896 = vsyncpa [#allocation6], 1 }

</bundles_post_ra>
